<compile_context>
chip_gen: v5e
topology: v5e:2x2
jax: 0.10.0
libtpu: 0.0.40
codegen_flags: <defaults>
</compile_context>

<pallas_src>
import functools
from typing import NamedTuple

import jax
import jax.numpy as jnp
from jax.experimental import pallas as pl
from jax.experimental.pallas import tpu as pltpu

LEAKY_SLOPE = 0.01   # torch.nn.LeakyReLU default
BN_EPS = 1e-5        # torch.nn.BatchNorm2d default


# --------------------------------------------------------------------------- #
# Small helpers
# --------------------------------------------------------------------------- #
def _round_up(x, m):
    return ((x + m - 1) // m) * m


def _vmem_budget_bytes():
    """Generation-aware scoped-VMEM limit: ~half of physical VMEM
    (64 MiB on v5e/v6e's 128 MiB, 32 MiB on v7x's 64 MiB / unknown chips)."""
    try:
        cap = int(pltpu.get_tpu_info().vmem_capacity_bytes)
    except Exception:
        cap = 64 * 1024 * 1024
    return max(32 * 1024 * 1024, min(cap // 2, 64 * 1024 * 1024))


_VMEM_LIMIT = _vmem_budget_bytes()             # passed as vmem_limit_bytes
_DIRECT_VMEM_BUDGET = (_VMEM_LIMIT * 3) // 4   # admission check for resident planes


def _pick_k_tile(c):
    """(padded_dim, tile) for a contraction dim.  K <= 1024 stays un-tiled
    (nk == 1) so the kernels skip the accumulator round-trip entirely."""
    if c <= 1024:
        return c, c
    for t in (1024, 512, 384, 256, 128):
        if c % t == 0:
            return c, t
    cp = _round_up(c, 128)
    for t in (1024, 512, 384, 256, 128):
        if cp % t == 0:
            return cp, t
    return cp, 128


def _pick_n_tile(c):
    """Lane-dense (multiple-of-128) output channels; 256-wide blocks preferred
    (256-wide MXU on v6e/v7x, >=2 parallel Cout blocks on the wide layers)."""
    cp = c if c % 128 == 0 else _round_up(c, 128)
    if cp <= 256:
        return cp, cp
    if cp % 256 == 0:
        return cp, 256
    return cp, 128


def _pick_m_tile(m):
    if m <= 256:
        return m, m
    return _round_up(m, 256), 256


def _blk_vmem_bytes(shape, dtype_bytes):
    lead = 1
    for d in shape[:-2]:
        lead *= d
    return lead * _round_up(shape[-2], 8) * _round_up(shape[-1], 128) * dtype_bytes


def _apply_act(y, act):
    if act == "leaky":
        return jnp.where(y >= 0, y, LEAKY_SLOPE * y)
    if act == "relu":
        return jnp.maximum(y, 0.0)
    return y


# --------------------------------------------------------------------------- #
# Kernel 1: fused GEMM + per-channel shift + activation (+ residual)
# --------------------------------------------------------------------------- #
def _gemm_kernel(act, nk, has_res, x_ref, w_ref, sh_ref, *rest):
    if has_res:
        r_ref, rest = rest[0], rest[1:]
    o_ref = rest[0]

    def epilogue(acc):
        y = _apply_act(acc + sh_ref[...], act)
        if has_res:
            y = y + r_ref[...].astype(jnp.float32)
        o_ref[...] = y.astype(o_ref.dtype)

    part = jnp.dot(x_ref[...], w_ref[...], preferred_element_type=jnp.float32)

    if nk == 1:                       # single-k specialization: no scratch needed
        epilogue(part)
    else:                             # only reachable for the huge-K im2col fallback
        acc_ref = rest[1]
        k = pl.program_id(2)

        @pl.when(k == 0)
        def _():
            acc_ref[...] = jnp.zeros_like(acc_ref)

        acc_ref[...] += part

        @pl.when(k == nk - 1)
        def _():
            epilogue(acc_ref[...])


def fused_gemm(x, w, shift, act, residual=None):
    """y[M,Cout] = act(x @ w + shift) (+ residual).  bf16 in, bf16 out."""
    M, K = x.shape
    Cout = w.shape[1]
    Mp, tm = _pick_m_tile(M)
    Kp, tk = _pick_k_tile(K)
    Np, tn = _pick_n_tile(Cout)

    if Mp != M:
        x = jnp.pad(x, ((0, Mp - M), (0, 0)))
        if residual is not None:
            residual = jnp.pad(residual, ((0, Mp - M), (0, 0)))
    if Kp != K:
        x = jnp.pad(x, ((0, 0), (0, Kp - K)))
        w = jnp.pad(w, ((0, Kp - K), (0, 0)))
    if Np != Cout:
        w = jnp.pad(w, ((0, 0), (0, Np - Cout)))
        shift = jnp.pad(shift, ((0, 0), (0, Np - Cout)))
        if residual is not None:
            residual = jnp.pad(residual, ((0, 0), (0, Np - Cout)))

    nk = Kp // tk
    has_res = residual is not None

    if nk == 1:
        grid = (Mp // tm, Np // tn)
        xmap = lambda i, j: (i, 0)
        wmap = lambda i, j: (0, j)
        vmap_ = lambda i, j: (0, j)
        omap = lambda i, j: (i, j)
        dims = ("parallel", "parallel")
    else:
        grid = (Mp // tm, Np // tn, nk)
        xmap = lambda i, j, k: (i, k)
        wmap = lambda i, j, k: (k, j)
        vmap_ = lambda i, j, k: (0, j)
        omap = lambda i, j, k: (i, j)
        dims = ("parallel", "parallel", "arbitrary")

    in_specs = [
        pl.BlockSpec((tm, tk), xmap),
        pl.BlockSpec((tk, tn), wmap),
        pl.BlockSpec((1, tn), vmap_),
    ]
    args = [x, w, shift]
    if has_res:
        in_specs.append(pl.BlockSpec((tm, tn), omap))
        args.append(residual)
    scratch = [pltpu.VMEM((tm, tn), jnp.float32)] if nk > 1 else []

    out = pl.pallas_call(
        functools.partial(_gemm_kernel, act, nk, has_res),
        out_shape=jax.ShapeDtypeStruct((Mp, Np), jnp.bfloat16),
        grid_spec=pltpu.PrefetchScalarGridSpec(
            num_scalar_prefetch=0,
            grid=grid,
            in_specs=in_specs,
            out_specs=pl.BlockSpec((tm, tn), omap),
            scratch_shapes=scratch,
        ),
        compiler_params=pltpu.CompilerParams(
            dimension_semantics=dims, vmem_limit_bytes=_VMEM_LIMIT),
    )(*args)
    if Mp != M or Np != Cout:
        out = out[:M, :Cout]
    return out


# --------------------------------------------------------------------------- #
# Kernel 2: direct (im2col-free) KxK convolution, fused epilogue
# --------------------------------------------------------------------------- #
def _direct_conv_kernel(KH, KW, s, Ho, Wo, act, nk, has_res,
                        x_ref, w_ref, sh_ref, *rest):
    if has_res:
        r_ref, rest = rest[0], rest[1:]
    o_ref = rest[0]
    N = o_ref.shape[0]
    tn = o_ref.shape[3]
    m2 = N * Ho * Wo

    # TODO(synk): the per-tap slice+reshape can force sublane relayout copies when
    # the window offset crosses (8,128) tile boundaries; Mosaic's dot wants rank-2
    # operands so a rank-preserving contraction is not used here.
    part = None
    for dy in range(KH):
        for dx in range(KW):
            if s == 1:
                xs = x_ref[:, dy:dy + Ho, dx:dx + Wo, :]
            else:  # space-to-depth layout: (N, Hs, Ws, s*s, Cin)
                ph = (dy % s) * s + (dx % s)
                xs = x_ref[:, dy // s:dy // s + Ho, dx // s:dx // s + Wo, ph, :]
            xs = xs.reshape(m2, xs.shape[-1])
            d = jnp.dot(xs, w_ref[dy * KW + dx], preferred_element_type=jnp.float32)
            part = d if part is None else part + d

    def epilogue(acc):
        y = _apply_act(acc + sh_ref[...], act)
        y = y.reshape(N, Ho, Wo, tn)
        if has_res:
            y = y + r_ref[...].astype(jnp.float32)
        o_ref[...] = y.astype(o_ref.dtype)

    if nk == 1:
        epilogue(part)
    else:
        acc_ref = rest[1]
        k = pl.program_id(1)

        @pl.when(k == 0)
        def _():
            acc_ref[...] = jnp.zeros_like(acc_ref)

        acc_ref[...] += part

        @pl.when(k == nk - 1)
        def _():
            epilogue(acc_ref[...])


def conv_direct(x, w, shift, stride, pad, act, residual=None):
    N, H, W, Cin = x.shape
    KH, KW, _, Cout = w.shape
    s = stride
    Ho = (H + 2 * pad - KH) // s + 1
    Wo = (W + 2 * pad - KW) // s + 1
    Cp, tk = _pick_k_tile(Cin)
    Np, tn = _pick_n_tile(Cout)

    if Cp != Cin:
        x = jnp.pad(x, ((0, 0), (0, 0), (0, 0), (0, Cp - Cin)))
        w = jnp.pad(w, ((0, 0), (0, 0), (0, Cp - Cin), (0, 0)))
    if Np != Cout:
        w = jnp.pad(w, ((0, 0), (0, 0), (0, 0), (0, Np - Cout)))
        shift = jnp.pad(shift, ((0, 0), (0, Np - Cout)))
        if residual is not None:
            residual = jnp.pad(residual, ((0, 0), (0, 0), (0, 0), (0, Np - Cout)))

    xp = jnp.pad(x, ((0, 0), (pad, pad), (pad, pad), (0, 0)))
    Hp, Wp = H + 2 * pad, W + 2 * pad
    if s == 1:
        xin = xp
        x_block = (N, Hp, Wp, tk)
        x_zero = (0, 0, 0)
    else:
        # TODO(synk): this space-to-depth relayout is one extra HBM round-trip of
        # the padded plane; writing the phase layout from the producer would fix it.
        Hs, Ws = -(-Hp // s), -(-Wp // s)
        xp = jnp.pad(xp, ((0, 0), (0, Hs * s - Hp), (0, Ws * s - Wp), (0, 0)))
        xin = xp.reshape(N, Hs, s, Ws, s, Cp).transpose(0, 1, 3, 2, 4, 5)
        xin = xin.reshape(N, Hs, Ws, s * s, Cp)
        x_block = (N, Hs, Ws, s * s, tk)
        x_zero = (0, 0, 0, 0)

    nk = Cp // tk
    has_res = residual is not None
    if nk == 1:
        grid = (Np // tn,)
        xmap = lambda j: x_zero + (0,)
        wmap = lambda j: (0, 0, j)
        vmap_ = lambda j: (0, j)
        omap = lambda j: (0, 0, 0, j)
        dims = ("parallel",)
    else:
        grid = (Np // tn, nk)
        xmap = lambda j, k: x_zero + (k,)
        wmap = lambda j, k: (0, k, j)
        vmap_ = lambda j, k: (0, j)
        omap = lambda j, k: (0, 0, 0, j)
        dims = ("parallel", "arbitrary")

    in_specs = [
        pl.BlockSpec(x_block, xmap),
        pl.BlockSpec((KH * KW, tk, tn), wmap),
        pl.BlockSpec((1, tn), vmap_),
    ]
    args = [xin, w.reshape(KH * KW, Cp, Np), shift]
    if has_res:
        in_specs.append(pl.BlockSpec((N, Ho, Wo, tn), omap))
        args.append(residual)
    scratch = [pltpu.VMEM((N * Ho * Wo, tn), jnp.float32)] if nk > 1 else []

    out = pl.pallas_call(
        functools.partial(_direct_conv_kernel, KH, KW, s, Ho, Wo, act, nk, has_res),
        out_shape=jax.ShapeDtypeStruct((N, Ho, Wo, Np), jnp.bfloat16),
        grid_spec=pltpu.PrefetchScalarGridSpec(
            num_scalar_prefetch=0,
            grid=grid,
            in_specs=in_specs,
            out_specs=pl.BlockSpec((N, Ho, Wo, tn), omap),
            scratch_shapes=scratch,
        ),
        compiler_params=pltpu.CompilerParams(
            dimension_semantics=dims, vmem_limit_bytes=_VMEM_LIMIT),
    )(*args)
    if Np != Cout:
        out = out[..., :Cout]
    return out


# --------------------------------------------------------------------------- #
# Kernel 3: whole ResiduaLayer (1x1+ReLU -> 3x3+ReLU -> +x) in one pallas_call
# --------------------------------------------------------------------------- #
def _resblock_kernel(x_ref, w1_ref, sh1_ref, w2_ref, sh2_ref, o_ref, ybuf_ref):
    # x_ref: (N, H+2, W+2, C) zero-padded input plane (padding done in the wrapper
    # so the kernel only needs full-ref stores and static-slice loads).
    N, Hp, Wp, C = x_ref.shape
    H, W = Hp - 2, Wp - 2
    Ch = w1_ref.shape[1]
    mp = N * Hp * Wp
    m = N * H * W

    # 1x1 conv + bias + ReLU on the padded plane, then re-zero the halo so the 3x3
    # below sees proper zero padding.
    y = jnp.dot(x_ref[...].reshape(mp, C), w1_ref[...],
                preferred_element_type=jnp.float32)
    y = jnp.maximum(y + sh1_ref[...], 0.0).reshape(N, Hp, Wp, Ch)
    hi = jax.lax.broadcasted_iota(jnp.int32, (N, Hp, Wp, Ch), 1)
    wi = jax.lax.broadcasted_iota(jnp.int32, (N, Hp, Wp, Ch), 2)
    interior = (hi >= 1) & (hi <= H) & (wi >= 1) & (wi <= W)
    ybuf_ref[...] = jnp.where(interior, y, 0.0).astype(ybuf_ref.dtype)

    # 3x3 conv + bias + ReLU, then the residual skip-add.
    acc = None
    for dy in range(3):
        for dx in range(3):
            xs = ybuf_ref[:, dy:dy + H, dx:dx + W, :].reshape(m, Ch)
            d = jnp.dot(xs, w2_ref[dy * 3 + dx], preferred_element_type=jnp.float32)
            acc = d if acc is None else acc + d
    res = x_ref[:, 1:1 + H, 1:1 + W, :].reshape(m, C).astype(jnp.float32)
    out = jnp.maximum(acc + sh2_ref[...], 0.0) + res
    o_ref[...] = out.reshape(N, H, W, C).astype(o_ref.dtype)


def resblock_fused(x, w1, sh1, w2, sh2):
    N, H, W, C = x.shape
    Ch = w1.shape[-1]
    xp = jnp.pad(x, ((0, 0), (1, 1), (1, 1), (0, 0)))
    return pl.pallas_call(
        _resblock_kernel,
        out_shape=jax.ShapeDtypeStruct((N, H, W, C), jnp.bfloat16),
        grid_spec=pltpu.PrefetchScalarGridSpec(
            num_scalar_prefetch=0,
            grid=(1,),
            in_specs=[
                pl.BlockSpec((N, H + 2, W + 2, C), lambda i: (0, 0, 0, 0)),
                pl.BlockSpec((C, Ch), lambda i: (0, 0)),
                pl.BlockSpec((1, Ch), lambda i: (0, 0)),
                pl.BlockSpec((9, Ch, C), lambda i: (0, 0, 0)),
                pl.BlockSpec((1, C), lambda i: (0, 0)),
            ],
            out_specs=pl.BlockSpec((N, H, W, C), lambda i: (0, 0, 0, 0)),
            scratch_shapes=[pltpu.VMEM((N, H + 2, W + 2, Ch), jnp.bfloat16)],
        ),
        compiler_params=pltpu.CompilerParams(
            dimension_semantics=("arbitrary",), vmem_limit_bytes=_VMEM_LIMIT),
    )(xp, w1.reshape(C, Ch), sh1, w2.reshape(9, Ch, C), sh2)


def _resblock_fits(N, H, W, C):
    Ch = C // 2
    xb = _blk_vmem_bytes((N, H + 2, W + 2, C), 2)
    ob = _blk_vmem_bytes((N, H, W, C), 2)
    w1b = _blk_vmem_bytes((C, Ch), 2)
    w2b = _blk_vmem_bytes((9, Ch, C), 2)
    yb = _blk_vmem_bytes((N, H + 2, W + 2, Ch), 2)
    fb = (_blk_vmem_bytes((N * (H + 2) * (W + 2), Ch), 4)
          + _blk_vmem_bytes((N, H + 2, W + 2, Ch), 4)
          + _blk_vmem_bytes((N * H * W, C), 4))
    return 2 * (xb + w1b + w2b + ob) + yb + fb <= _DIRECT_VMEM_BUDGET


# --------------------------------------------------------------------------- #
# Conv dispatch (1x1 GEMM / direct KxK / im2col GEMM for stem & huge planes)
# --------------------------------------------------------------------------- #
class ConvCfg(NamedTuple):
    k: int
    stride: int
    pad: int
    act: str


def conv1x1(x, w, shift, act, residual=None):
    N, H, W, Cin = x.shape
    Cout = w.shape[-1]
    r2 = residual.reshape(N * H * W, Cout) if residual is not None else None
    y = fused_gemm(x.reshape(N * H * W, Cin), w.reshape(Cin, Cout), shift, act, r2)
    return y.reshape(N, H, W, Cout)


def conv_im2col(x, w, shift, stride, pad, act, residual=None):
    N, H, W, Cin = x.shape
    KH, KW, _, Cout = w.shape
    Ho = (H + 2 * pad - KH) // stride + 1
    Wo = (W + 2 * pad - KW) // stride + 1
    xp = jnp.pad(x, ((0, 0), (pad, pad), (pad, pad), (0, 0)))
    cols = []
    for dy in range(KH):
        for dx in range(KW):
            cols.append(xp[:, dy:dy + stride * Ho:stride,
                           dx:dx + stride * Wo:stride, :])
    patches = jnp.concatenate(cols, axis=-1).reshape(N * Ho * Wo, KH * KW * Cin)
    r2 = residual.reshape(N * Ho * Wo, Cout) if residual is not None else None
    y = fused_gemm(patches, w.reshape(KH * KW * Cin, Cout), shift, act, r2)
    return y.reshape(N, Ho, Wo, Cout)


def _direct_fits(N, H, W, Cin, Cout, KH, KW, s, pad):
    Ho = (H + 2 * pad - KH) // s + 1
    Wo = (W + 2 * pad - KW) // s + 1
    Hp, Wp = H + 2 * pad, W + 2 * pad
    Cp, tk = _pick_k_tile(Cin)
    _, tn = _pick_n_tile(Cout)
    if s == 1:
        xb = _blk_vmem_bytes((N, Hp, Wp, tk), 2)
    else:
        Hs, Ws = -(-Hp // s), -(-Wp // s)
        xb = _blk_vmem_bytes((N, Hs, Ws, s * s, tk), 2)
    wb = _blk_vmem_bytes((KH * KW, tk, tn), 2)
    ob = _blk_vmem_bytes((N, Ho, Wo, tn), 2)
    ab = _blk_vmem_bytes((N * Ho * Wo, tn), 4) if Cp // tk > 1 else 0
    fb = _blk_vmem_bytes((N * Ho * Wo, tn), 4)
    # inputs/outputs double-buffered; +2*ob slack for an optional residual input.
    return 2 * xb + 2 * wb + 4 * ob + ab + fb <= _DIRECT_VMEM_BUDGET


def apply_conv(cfg, wts, x, residual=None):
    w, shift = wts["w"], wts["shift"]
    if cfg.k == 1 and cfg.stride == 1 and cfg.pad == 0:
        return conv1x1(x, w, shift, cfg.act, residual)
    N, H, W, Cin = x.shape
    Cout = w.shape[-1]
    if Cin < 16:
        # Stem (Cin=3): one K=27 im2col GEMM instead of a tk=3 direct conv that
        # contracts only 3 of the MXU rows per pass.
        return conv_im2col(x, w, shift, cfg.stride, cfg.pad, cfg.act, residual)
    if _direct_fits(N, H, W, Cin, Cout, cfg.k, cfg.k, cfg.stride, cfg.pad):
        return conv_direct(x, w, shift, cfg.stride, cfg.pad, cfg.act, residual)
    # TODO(synk): very large planes want an H-tiled direct kernel with halo DMA
    # (matters most on v7x's 64 MiB VMEM); fall back to the im2col GEMM for those.
    return conv_im2col(x, w, shift, cfg.stride, cfg.pad, cfg.act, residual)


def run_blocks(static, weights, x):
    for (tag, cfg), wts in zip(static, weights):
        if tag == "conv":
            x = apply_conv(cfg, wts, x)
        else:  # residual block
            c1, c2 = cfg
            w1, w2 = wts
            N, H, W, C = x.shape
            if (c1.k == 1 and c1.stride == 1 and c1.pad == 0 and c1.act == "relu"
                    and c2.k == 3 and c2.stride == 1 and c2.pad == 1
                    and c2.act == "relu" and _resblock_fits(N, H, W, C)):
                x = resblock_fused(x, w1["w"], w1["shift"], w2["w"], w2["shift"])
            else:  # fallback: skip-add fused into the 2nd conv's epilogue
                y = apply_conv(c1, w1, x)
                x = apply_conv(c2, w2, y, residual=x)
    return x


def upsample2(x):  # nearest, scale_factor=2 (broadcast, no repeated copies)
    N, H, W, C = x.shape
    y = jnp.broadcast_to(x[:, :, None, :, None, :], (N, H, 2, W, 2, C))
    return y.reshape(N, 2 * H, 2 * W, C)


# --------------------------------------------------------------------------- #
# Deterministic parameter initialization (synthetic weights, scale folded, bf16)
# --------------------------------------------------------------------------- #
class ParamGen:
    def __init__(self, key):
        self.key = key

    def next(self):
        self.key, k = jax.random.split(self.key)
        return k


def _init_conv(pg, cin, cout, k, with_bn):
    fan_in = cin * k * k
    w = jax.random.normal(pg.next(), (k, k, cin, cout), jnp.float32) / jnp.sqrt(fan_in)
    b = 0.01 * jax.random.normal(pg.next(), (cout,), jnp.float32)
    if with_bn:  # inference-mode BatchNorm folded into the weights / shift
        gamma = 1.0 + 0.1 * jax.random.normal(pg.next(), (cout,), jnp.float32)
        beta = 0.1 * jax.random.normal(pg.next(), (cout,), jnp.float32)
        mean = 0.1 * jax.random.normal(pg.next(), (cout,), jnp.float32)
        var = 0.9 + 0.1 * jnp.abs(jax.random.normal(pg.next(), (cout,), jnp.float32))
        sc = gamma / jnp.sqrt(var + BN_EPS)
        shift = (b - mean) * sc + beta
    else:
        sc = jnp.ones((cout,), jnp.float32)
        shift = b
    # Fold the per-channel scale into the weights in f32, then a single bf16 cast.
    w_folded = (w * sc.reshape(1, 1, 1, cout)).astype(jnp.bfloat16)
    return {"w": w_folded, "shift": shift.reshape(1, cout).astype(jnp.float32)}


def init_mainnet(key):
    pg = ParamGen(key)

    def CL(cin, cout, k, s, p):          # ConvlotionLayer: Conv + BN + LeakyReLU
        return ("conv", (ConvCfg(k, s, p, "leaky"), _init_conv(pg, cin, cout, k, True)))

    def RAW(cin, cout, k, s, p, act):    # plain Conv2d (+ optional activation)
        return ("conv", (ConvCfg(k, s, p, act), _init_conv(pg, cin, cout, k, False)))

    def DS(cin, cout):                   # Downsamle: Conv2d 3x3 stride 2, no act
        return RAW(cin, cout, 3, 2, 1, "none")

    def RES(ch):                         # ResiduaLayer
        c1 = (ConvCfg(1, 1, 0, "relu"), _init_conv(pg, ch, ch // 2, 1, False))
        c2 = (ConvCfg(3, 1, 1, "relu"), _init_conv(pg, ch // 2, ch, 3, False))
        return ("res", (c1, c2))

    def CSET(cin, cout):                 # Convolution_Set
        return [CL(cin, cout, 1, 1, 0), CL(cout, cin, 3, 1, 1),
                CL(cin, cout, 1, 1, 0), CL(cout, cin, 3, 1, 1),
                CL(cin, cout, 1, 1, 0)]

    combined = {
        "trunk52": ([CL(3, 32, 3, 1, 1), DS(32, 64), RES(64), DS(64, 128),
                     RES(128), RES(128), DS(128, 256)]
                    + [RES(256) for _ in range(8)]),
        "trunk26": [DS(256, 512)] + [RES(512) for _ in range(8)],
        "trunk13": [DS(512, 1024)] + [RES(1024) for _ in range(4)],
        "set13": CSET(1024, 512),
        "det13": [CL(512, 1024, 3, 1, 1), RAW(1024, 45, 1, 1, 0, "none")],
        "up13": [CL(512, 256, 1, 1, 0)],
        "set26": CSET(768, 256),
        "det26": [CL(256, 512, 3, 1, 1), RAW(512, 45, 1, 1, 0, "none")],
        "up26": [CL(256, 128, 1, 1, 0)],
        "set52": CSET(384, 128),
        "det52": [CL(128, 256, 3, 1, 1), RAW(256, 45, 1, 1, 0, "none")],
    }
    # TODO(synk): the CSET 1x1/3x3 chains could be fused like the residual blocks
    # (activation resident in VMEM, weights streamed) for a further launch-count win.

    static, weights = {}, {}
    for name, blocks in combined.items():
        st, wt = [], []
        for tag, item in blocks:
            if tag == "conv":
                cfg, wts = item
                st.append(("conv", cfg))
                wt.append(wts)
            else:
                (c1, w1), (c2, w2) = item
                st.append(("res", (c1, c2)))
                wt.append((w1, w2))
        static[name] = st
        weights[name] = wt
    return static, weights


# --------------------------------------------------------------------------- #
# Mainnet forward (whole model under a single jax.jit)
# --------------------------------------------------------------------------- #
def mainnet_forward(static, weights, x_nchw):
    x = jnp.transpose(x_nchw, (0, 2, 3, 1)).astype(jnp.bfloat16)   # NCHW -> NHWC

    h52 = run_blocks(static["trunk52"], weights["trunk52"], x)
    h26 = run_blocks(static["trunk26"], weights["trunk26"], h52)
    h13 = run_blocks(static["trunk13"], weights["trunk13"], h26)

    cout13 = run_blocks(static["set13"], weights["set13"], h13)
    feat13 = run_blocks(static["det13"], weights["det13"], cout13)
    up13 = upsample2(run_blocks(static["up13"], weights["up13"], cout13))
    cat13 = jnp.concatenate([up13, h26], axis=-1)       # torch.cat dim=1 == channels

    cout26 = run_blocks(static["set26"], weights["set26"], cat13)
    feat26 = run_blocks(static["det26"], weights["det26"], cout26)
    up26 = upsample2(run_blocks(static["up26"], weights["up26"], cout26))
    cat26 = jnp.concatenate([up26, h52], axis=-1)

    cout52 = run_blocks(static["set52"], weights["set52"], cat26)
    feat52 = run_blocks(static["det52"], weights["det52"], cout52)

    to_nchw = lambda t: jnp.transpose(t, (0, 3, 1, 2)).astype(jnp.float32)
    return to_nchw(feat13), to_nchw(feat26), to_nchw(feat52)


# --------------------------------------------------------------------------- #
# Self-checks against lax.conv (loose tolerance for bf16)
# --------------------------------------------------------------------------- #
def _conv_reference(x, w, scale, shift, stride, pad, act, residual=None):
    y = jax.lax.conv_general_dilated(
        x.astype(jnp.float32), w.astype(jnp.float32),
        window_strides=(stride, stride), padding=[(pad, pad), (pad, pad)],
        dimension_numbers=("NHWC", "HWIO", "NHWC"))
    y = y * scale.reshape(1, 1, 1, -1) + shift.reshape(1, 1, 1, -1)
    y = _apply_act(y, act)
    if residual is not None:
        y = y + residual.astype(jnp.float32)
    return y


def _self_check():
    kx, kw, kr, ks, kb = jax.random.split(jax.random.PRNGKey(42), 5)
    cases = [
        # cin, cout, hw, k, s, p, act,    residual
        (128, 128, 8, 3, 1, 1, "leaky", True),    # direct 3x3 s1 + fused skip-add
        (64, 128, 8, 3, 2, 1, "none", False),     # direct 3x3 s2 (phase layout)
        (768, 256, 4, 1, 1, 0, "relu", False),    # 1x1 GEMM, K untiled (nk==1)
        (1024, 45, 2, 1, 1, 0, "none", False),    # detection-head GEMM, Cout padded
    ]
    for cin, cout, hw, k, s, p, act, with_res in cases:
        x = jax.random.normal(kx, (2, hw, hw, cin), jnp.float32)
        w = jax.random.normal(kw, (k, k, cin, cout), jnp.float32) / jnp.sqrt(cin * k * k)
        scale = 1.0 + 0.1 * jax.random.normal(ks, (cout,), jnp.float32)
        shift = 0.1 * jax.random.normal(kb, (cout,), jnp.float32)
        res = (jax.random.normal(kr, (2, hw // s, hw // s, cout), jnp.float32)
               if with_res else None)
        w_folded = (w * scale.reshape(1, 1, 1, -1)).astype(jnp.bfloat16)
        got = apply_conv(ConvCfg(k, s, p, act),
                         {"w": w_folded,
                          "shift": shift.reshape(1, -1).astype(jnp.float32)},
                         x.astype(jnp.bfloat16),
                         None if res is None else res.astype(jnp.bfloat16))
        want = _conv_reference(x, w, scale, shift, s, p, act, res)
        err = float(jnp.max(jnp.abs(got.astype(jnp.float32) - want)))
        assert err < 0.1, (k, s, act, err)


def _resblock_check():
    keys = jax.random.split(jax.random.PRNGKey(7), 5)
    C, hw = 128, 8
    x = jax.random.normal(keys[0], (2, hw, hw, C), jnp.float32)
    w1 = jax.random.normal(keys[1], (1, 1, C, C // 2), jnp.float32) / jnp.sqrt(C)
    b1 = 0.05 * jax.random.normal(keys[2], (C // 2,), jnp.float32)
    w2 = jax.random.normal(keys[3], (3, 3, C // 2, C), jnp.float32) / jnp.sqrt(9 * C // 2)
    b2 = 0.05 * jax.random.normal(keys[4], (C,), jnp.float32)
    y = _conv_reference(x, w1, jnp.ones((C // 2,), jnp.float32), b1, 1, 0, "relu")
    y = _conv_reference(y, w2, jnp.ones((C,), jnp.float32), b2, 1, 1, "relu")
    want = y + x
    got = resblock_fused(x.astype(jnp.bfloat16),
                         w1.astype(jnp.bfloat16), b1.reshape(1, -1),
                         w2.astype(jnp.bfloat16), b2.reshape(1, -1))
    err = float(jnp.max(jnp.abs(got.astype(jnp.float32) - want)))
    assert err < 0.1, ("resblock", err)


if __name__ == "__main__":
    _self_check()
    _resblock_check()

    key = jax.random.PRNGKey(0)
    pkey, xkey = jax.random.split(key)
    static, weights = init_mainnet(pkey)

    # Small input: batch=2, 3 channels, 32x32 spatial (must be divisible by 32).
    x = jax.random.normal(xkey, (2, 3, 32, 32), jnp.float32)

    forward = jax.jit(functools.partial(mainnet_forward, static))
    f13, f26, f52 = forward(weights, x)
    jax.block_until_ready((f13, f26, f52))

    assert f13.shape == (2, 45, 1, 1), f13.shape
    assert f26.shape == (2, 45, 2, 2), f26.shape
    assert f52.shape == (2, 45, 4, 4), f52.shape
    assert all(bool(jnp.all(jnp.isfinite(t))) for t in (f13, f26, f52))
    print("KERNEL_OK")
</pallas_src>

<mosaic_0001>
module attributes {stable_mosaic.version = 11 : i64} {
  func.func @_direct_conv_kernel(%arg0: i32, %arg1: memref<2x10x10x128xbf16, #tpu.memory_space<vmem>>, %arg2: memref<9x128x128xbf16, #tpu.memory_space<vmem>>, %arg3: memref<1x128xf32, #tpu.memory_space<vmem>>, %arg4: memref<2x8x8x128xbf16, #tpu.memory_space<vmem>>, %arg5: memref<2x8x8x128xbf16, #tpu.memory_space<vmem>>) attributes {dimension_semantics = [#tpu.dimension_semantics<parallel>], iteration_bounds = array<i64: 1>, scalar_prefetch = 0 : i64, scratch_operands = 0 : i64, tpu.core_type = #tpu.core_type<tc>, window_params = [{pipeline_mode = #tpu.pipeline_mode<synchronous>, transform_indices = @transform_0, window_bounds = array<i64: 2, 10, 10, 128>}, {transform_indices = @transform_1, window_bounds = array<i64: 9, 128, 128>}, {transform_indices = @transform_2, window_bounds = array<i64: 1, 128>}, {transform_indices = @transform_3, window_bounds = array<i64: 2, 8, 8, 128>}, {transform_indices = @transform_4, window_bounds = array<i64: 2, 8, 8, 128>}]} {
    %c0 = arith.constant 0 : index
    %c0_0 = arith.constant 0 : index
    %c0_1 = arith.constant 0 : index
    %c0_2 = arith.constant 0 : index
    %0 = vector.load %arg1[%c0, %c0_0, %c0_1, %c0_2] : memref<2x10x10x128xbf16, #tpu.memory_space<vmem>>, vector<2x8x8x128xbf16>
    %1 = vector.shape_cast %0 : vector<2x8x8x128xbf16> to vector<128x128xbf16>
    %c0_3 = arith.constant 0 : index
    %c0_4 = arith.constant 0 : index
    %c0_5 = arith.constant 0 : index
    %2 = vector.load %arg2[%c0_3, %c0_4, %c0_5] : memref<9x128x128xbf16, #tpu.memory_space<vmem>>, vector<1x128x128xbf16>
    %3 = vector.shape_cast %2 : vector<1x128x128xbf16> to vector<128x128xbf16>
    %cst = arith.constant dense<0.000000e+00> : vector<128x128xf32>
    %4 = tpu.matmul %1, %3, %cst {dimension_numbers = #tpu.dot_dimension_numbers<[1], [0], [0], [1], [0, 0, 1, 1], [], []>} : vector<128x128xbf16>, vector<128x128xbf16>, vector<128x128xf32> -> vector<128x128xf32>
    %c0_6 = arith.constant 0 : index
    %c0_7 = arith.constant 0 : index
    %c1 = arith.constant 1 : index
    %c0_8 = arith.constant 0 : index
    %5 = vector.load %arg1[%c0_6, %c0_7, %c1, %c0_8] : memref<2x10x10x128xbf16, #tpu.memory_space<vmem>>, vector<2x8x8x128xbf16>
    %6 = vector.shape_cast %5 : vector<2x8x8x128xbf16> to vector<128x128xbf16>
    %c1_9 = arith.constant 1 : index
    %c0_10 = arith.constant 0 : index
    %c0_11 = arith.constant 0 : index
    %7 = vector.load %arg2[%c1_9, %c0_10, %c0_11] : memref<9x128x128xbf16, #tpu.memory_space<vmem>>, vector<1x128x128xbf16>
    %8 = vector.shape_cast %7 : vector<1x128x128xbf16> to vector<128x128xbf16>
    %cst_12 = arith.constant dense<0.000000e+00> : vector<128x128xf32>
    %9 = tpu.matmul %6, %8, %cst_12 {dimension_numbers = #tpu.dot_dimension_numbers<[1], [0], [0], [1], [0, 0, 1, 1], [], []>} : vector<128x128xbf16>, vector<128x128xbf16>, vector<128x128xf32> -> vector<128x128xf32>
    %10 = arith.addf %4, %9 : vector<128x128xf32>
    %c0_13 = arith.constant 0 : index
    %c0_14 = arith.constant 0 : index
    %c2 = arith.constant 2 : index
    %c0_15 = arith.constant 0 : index
    %11 = vector.load %arg1[%c0_13, %c0_14, %c2, %c0_15] : memref<2x10x10x128xbf16, #tpu.memory_space<vmem>>, vector<2x8x8x128xbf16>
    %12 = vector.shape_cast %11 : vector<2x8x8x128xbf16> to vector<128x128xbf16>
    %c2_16 = arith.constant 2 : index
    %c0_17 = arith.constant 0 : index
    %c0_18 = arith.constant 0 : index
    %13 = vector.load %arg2[%c2_16, %c0_17, %c0_18] : memref<9x128x128xbf16, #tpu.memory_space<vmem>>, vector<1x128x128xbf16>
    %14 = vector.shape_cast %13 : vector<1x128x128xbf16> to vector<128x128xbf16>
    %cst_19 = arith.constant dense<0.000000e+00> : vector<128x128xf32>
    %15 = tpu.matmul %12, %14, %cst_19 {dimension_numbers = #tpu.dot_dimension_numbers<[1], [0], [0], [1], [0, 0, 1, 1], [], []>} : vector<128x128xbf16>, vector<128x128xbf16>, vector<128x128xf32> -> vector<128x128xf32>
    %16 = arith.addf %10, %15 : vector<128x128xf32>
    %c0_20 = arith.constant 0 : index
    %c1_21 = arith.constant 1 : index
    %c0_22 = arith.constant 0 : index
    %c0_23 = arith.constant 0 : index
    %17 = vector.load %arg1[%c0_20, %c1_21, %c0_22, %c0_23] : memref<2x10x10x128xbf16, #tpu.memory_space<vmem>>, vector<2x8x8x128xbf16>
    %18 = vector.shape_cast %17 : vector<2x8x8x128xbf16> to vector<128x128xbf16>
    %c3 = arith.constant 3 : index
    %c0_24 = arith.constant 0 : index
    %c0_25 = arith.constant 0 : index
    %19 = vector.load %arg2[%c3, %c0_24, %c0_25] : memref<9x128x128xbf16, #tpu.memory_space<vmem>>, vector<1x128x128xbf16>
    %20 = vector.shape_cast %19 : vector<1x128x128xbf16> to vector<128x128xbf16>
    %cst_26 = arith.constant dense<0.000000e+00> : vector<128x128xf32>
    %21 = tpu.matmul %18, %20, %cst_26 {dimension_numbers = #tpu.dot_dimension_numbers<[1], [0], [0], [1], [0, 0, 1, 1], [], []>} : vector<128x128xbf16>, vector<128x128xbf16>, vector<128x128xf32> -> vector<128x128xf32>
    %22 = arith.addf %16, %21 : vector<128x128xf32>
    %c0_27 = arith.constant 0 : index
    %c1_28 = arith.constant 1 : index
    %c1_29 = arith.constant 1 : index
    %c0_30 = arith.constant 0 : index
    %23 = vector.load %arg1[%c0_27, %c1_28, %c1_29, %c0_30] : memref<2x10x10x128xbf16, #tpu.memory_space<vmem>>, vector<2x8x8x128xbf16>
    %24 = vector.shape_cast %23 : vector<2x8x8x128xbf16> to vector<128x128xbf16>
    %c4 = arith.constant 4 : index
    %c0_31 = arith.constant 0 : index
    %c0_32 = arith.constant 0 : index
    %25 = vector.load %arg2[%c4, %c0_31, %c0_32] : memref<9x128x128xbf16, #tpu.memory_space<vmem>>, vector<1x128x128xbf16>
    %26 = vector.shape_cast %25 : vector<1x128x128xbf16> to vector<128x128xbf16>
    %cst_33 = arith.constant dense<0.000000e+00> : vector<128x128xf32>
    %27 = tpu.matmul %24, %26, %cst_33 {dimension_numbers = #tpu.dot_dimension_numbers<[1], [0], [0], [1], [0, 0, 1, 1], [], []>} : vector<128x128xbf16>, vector<128x128xbf16>, vector<128x128xf32> -> vector<128x128xf32>
    %28 = arith.addf %22, %27 : vector<128x128xf32>
    %c0_34 = arith.constant 0 : index
    %c1_35 = arith.constant 1 : index
    %c2_36 = arith.constant 2 : index
    %c0_37 = arith.constant 0 : index
    %29 = vector.load %arg1[%c0_34, %c1_35, %c2_36, %c0_37] : memref<2x10x10x128xbf16, #tpu.memory_space<vmem>>, vector<2x8x8x128xbf16>
    %30 = vector.shape_cast %29 : vector<2x8x8x128xbf16> to vector<128x128xbf16>
    %c5 = arith.constant 5 : index
    %c0_38 = arith.constant 0 : index
    %c0_39 = arith.constant 0 : index
    %31 = vector.load %arg2[%c5, %c0_38, %c0_39] : memref<9x128x128xbf16, #tpu.memory_space<vmem>>, vector<1x128x128xbf16>
    %32 = vector.shape_cast %31 : vector<1x128x128xbf16> to vector<128x128xbf16>
    %cst_40 = arith.constant dense<0.000000e+00> : vector<128x128xf32>
    %33 = tpu.matmul %30, %32, %cst_40 {dimension_numbers = #tpu.dot_dimension_numbers<[1], [0], [0], [1], [0, 0, 1, 1], [], []>} : vector<128x128xbf16>, vector<128x128xbf16>, vector<128x128xf32> -> vector<128x128xf32>
    %34 = arith.addf %28, %33 : vector<128x128xf32>
    %c0_41 = arith.constant 0 : index
    %c2_42 = arith.constant 2 : index
    %c0_43 = arith.constant 0 : index
    %c0_44 = arith.constant 0 : index
    %35 = vector.load %arg1[%c0_41, %c2_42, %c0_43, %c0_44] : memref<2x10x10x128xbf16, #tpu.memory_space<vmem>>, vector<2x8x8x128xbf16>
    %36 = vector.shape_cast %35 : vector<2x8x8x128xbf16> to vector<128x128xbf16>
    %c6 = arith.constant 6 : index
    %c0_45 = arith.constant 0 : index
    %c0_46 = arith.constant 0 : index
    %37 = vector.load %arg2[%c6, %c0_45, %c0_46] : memref<9x128x128xbf16, #tpu.memory_space<vmem>>, vector<1x128x128xbf16>
    %38 = vector.shape_cast %37 : vector<1x128x128xbf16> to vector<128x128xbf16>
    %cst_47 = arith.constant dense<0.000000e+00> : vector<128x128xf32>
    %39 = tpu.matmul %36, %38, %cst_47 {dimension_numbers = #tpu.dot_dimension_numbers<[1], [0], [0], [1], [0, 0, 1, 1], [], []>} : vector<128x128xbf16>, vector<128x128xbf16>, vector<128x128xf32> -> vector<128x128xf32>
    %40 = arith.addf %34, %39 : vector<128x128xf32>
    %c0_48 = arith.constant 0 : index
    %c2_49 = arith.constant 2 : index
    %c1_50 = arith.constant 1 : index
    %c0_51 = arith.constant 0 : index
    %41 = vector.load %arg1[%c0_48, %c2_49, %c1_50, %c0_51] : memref<2x10x10x128xbf16, #tpu.memory_space<vmem>>, vector<2x8x8x128xbf16>
    %42 = vector.shape_cast %41 : vector<2x8x8x128xbf16> to vector<128x128xbf16>
    %c7 = arith.constant 7 : index
    %c0_52 = arith.constant 0 : index
    %c0_53 = arith.constant 0 : index
    %43 = vector.load %arg2[%c7, %c0_52, %c0_53] : memref<9x128x128xbf16, #tpu.memory_space<vmem>>, vector<1x128x128xbf16>
    %44 = vector.shape_cast %43 : vector<1x128x128xbf16> to vector<128x128xbf16>
    %cst_54 = arith.constant dense<0.000000e+00> : vector<128x128xf32>
    %45 = tpu.matmul %42, %44, %cst_54 {dimension_numbers = #tpu.dot_dimension_numbers<[1], [0], [0], [1], [0, 0, 1, 1], [], []>} : vector<128x128xbf16>, vector<128x128xbf16>, vector<128x128xf32> -> vector<128x128xf32>
    %46 = arith.addf %40, %45 : vector<128x128xf32>
    %c0_55 = arith.constant 0 : index
    %c2_56 = arith.constant 2 : index
    %c2_57 = arith.constant 2 : index
    %c0_58 = arith.constant 0 : index
    %47 = vector.load %arg1[%c0_55, %c2_56, %c2_57, %c0_58] : memref<2x10x10x128xbf16, #tpu.memory_space<vmem>>, vector<2x8x8x128xbf16>
    %48 = vector.shape_cast %47 : vector<2x8x8x128xbf16> to vector<128x128xbf16>
    %c8 = arith.constant 8 : index
    %c0_59 = arith.constant 0 : index
    %c0_60 = arith.constant 0 : index
    %49 = vector.load %arg2[%c8, %c0_59, %c0_60] : memref<9x128x128xbf16, #tpu.memory_space<vmem>>, vector<1x128x128xbf16>
    %50 = vector.shape_cast %49 : vector<1x128x128xbf16> to vector<128x128xbf16>
    %cst_61 = arith.constant dense<0.000000e+00> : vector<128x128xf32>
    %51 = tpu.matmul %48, %50, %cst_61 {dimension_numbers = #tpu.dot_dimension_numbers<[1], [0], [0], [1], [0, 0, 1, 1], [], []>} : vector<128x128xbf16>, vector<128x128xbf16>, vector<128x128xf32> -> vector<128x128xf32>
    %52 = arith.addf %46, %51 : vector<128x128xf32>
    %c0_62 = arith.constant 0 : index
    %c0_63 = arith.constant 0 : index
    %53 = vector.load %arg3[%c0_62, %c0_63] : memref<1x128xf32, #tpu.memory_space<vmem>>, vector<1x128xf32>
    %54 = vector.broadcast %53 : vector<1x128xf32> to vector<128x128xf32>
    %55 = arith.addf %52, %54 : vector<128x128xf32>
    %cst_64 = arith.constant 0.000000e+00 : f32
    %56 = vector.broadcast %cst_64 : f32 to vector<128x128xf32>
    %57 = arith.cmpf oge, %55, %56 : vector<128x128xf32>
    %cst_65 = arith.constant 0.00999999977 : f32
    %58 = vector.broadcast %cst_65 : f32 to vector<128x128xf32>
    %59 = arith.mulf %58, %55 : vector<128x128xf32>
    %60 = arith.select %57, %55, %59 : vector<128x128xi1>, vector<128x128xf32>
    %61 = vector.shape_cast %60 : vector<128x128xf32> to vector<2x8x8x128xf32>
    %c0_66 = arith.constant 0 : index
    %c0_67 = arith.constant 0 : index
    %c0_68 = arith.constant 0 : index
    %c0_69 = arith.constant 0 : index
    %62 = vector.load %arg4[%c0_66, %c0_67, %c0_68, %c0_69] : memref<2x8x8x128xbf16, #tpu.memory_space<vmem>>, vector<2x8x8x128xbf16>
    %63 = arith.extf %62 : vector<2x8x8x128xbf16> to vector<2x8x8x128xf32>
    %64 = arith.addf %61, %63 : vector<2x8x8x128xf32>
    %65 = arith.truncf %64 : vector<2x8x8x128xf32> to vector<2x8x8x128xbf16>
    %c0_70 = arith.constant 0 : index
    %c0_71 = arith.constant 0 : index
    %c0_72 = arith.constant 0 : index
    %c0_73 = arith.constant 0 : index
    %66 = vector.load %arg5[%c0_70, %c0_71, %c0_72, %c0_73] : memref<2x8x8x128xbf16, #tpu.memory_space<vmem>>, vector<2x8x8x128xbf16>
    tpu.vector_store %arg5[%c0_70, %c0_71, %c0_72, %c0_73], %65 {strides = array<i32>} : memref<2x8x8x128xbf16, #tpu.memory_space<vmem>>, vector<2x8x8x128xbf16>,
    return
  }
  func.func @transform_0(%arg0: i32) -> (i32, i32, i32, i32) {
    %c0_i32 = arith.constant 0 : i32
    %c0_i32_0 = arith.constant 0 : i32
    %c0_i32_1 = arith.constant 0 : i32
    %c0_i32_2 = arith.constant 0 : i32
    %c0_i32_3 = arith.constant 0 : i32
    return %c0_i32, %c0_i32_0, %c0_i32_1, %c0_i32_2 : i32, i32, i32, i32
  }
  func.func @transform_1(%arg0: i32) -> (i32, i32, i32) {
    %c0_i32 = arith.constant 0 : i32
    %c0_i32_0 = arith.constant 0 : i32
    %c0_i32_1 = arith.constant 0 : i32
    return %c0_i32, %c0_i32_0, %arg0 : i32, i32, i32
  }
  func.func @transform_2(%arg0: i32) -> (i32, i32) {
    %c0_i32 = arith.constant 0 : i32
    %c0_i32_0 = arith.constant 0 : i32
    return %c0_i32, %arg0 : i32, i32
  }
  func.func @transform_3(%arg0: i32) -> (i32, i32, i32, i32) {
    %c0_i32 = arith.constant 0 : i32
    %c0_i32_0 = arith.constant 0 : i32
    %c0_i32_1 = arith.constant 0 : i32
    %c0_i32_2 = arith.constant 0 : i32
    return %c0_i32, %c0_i32_0, %c0_i32_1, %arg0 : i32, i32, i32, i32
  }
  func.func @transform_4(%arg0: i32) -> (i32, i32, i32, i32) {
    %c0_i32 = arith.constant 0 : i32
    %c0_i32_0 = arith.constant 0 : i32
    %c0_i32_1 = arith.constant 0 : i32
    %c0_i32_2 = arith.constant 0 : i32
    return %c0_i32, %c0_i32_0, %c0_i32_1, %arg0 : i32, i32, i32, i32
  }
}

</mosaic_0001>

<bundles_post_ra>
// kernel: tpu_custom_call.1
= control target key start
LH: loop header
LB: loop body
LE: loop exit
PB: predicated region body
PF: predicated region fallthrough
CT: control target
= control target key end

     0   :  { %9 = vsyncpa [#allocation3], 0  ;;  %s4822_s0 = inlined_call_operand.vmem [shape: bf16[2,10,10,128], index: 0, kind: input, shape index: {}]   ;;  %s4823_s1 = inlined_call_operand.hbm [shape: bf16[9,128,128], index: 1, kind: input, shape index: {}]   ;;  %s4824_s2 = inlined_call_operand.vmem [shape: f32[1,128], index: 2, kind: input, shape index: {}]   ;;  %s4825_s3 = inlined_call_operand.vmem [shape: bf16[2,8,8,128], index: 3, kind: input, shape index: {}]   ;;  %s4826_s4 = inlined_call_operand.hbm [shape: bf16[2,8,8,128], index: 4, kind: output, shape index: {}]  }
   0x1   :  { %10 = vsyncpa [#allocation4], 0  ;;  %s17_s17 = sshll.u32 %s4823_s1, 4  ;;  %s3653_s18 = smov [#allocation2]   ;;  %s18_s17 = int_to_ptr.hbm [resolvable:$true] %s17_s17 }
   0x2   :  { %s19_s19 = sshll.u32 %s3653_s18, 4  ;;  %s3654_s20 = smov 64   ;;  %s20_s19 = int_to_ptr.vmem [resolvable:$true] %s19_s19 }
   0x3   :  { %s3655_s21 = smov 4  }
   0x4   :  { %25 = dma.hbm_to_vmem [thread:$0]  %s18_s17, 9216, %s20_s19, [#allocation3], %s3654_s20, %s3654_s20, %s3655_s21  }
   0x5   :  { %3649 = dma.done.wait [#allocation3], 9216  }
   0x6   :  { %3650 = vsyncadd [#allocation3], 4294958080  ;;  %v3401_v0 = vld [vmem:[#allocation2 + $0x78] sm:$0xff]  ;;  %vm82_vm0 = vsmask.f32 3328  ;;  %v3400_v1 = vld [vmem:[#allocation2 + $0x70] sm:$0xff] }
   0x7   :  { %3560 = vmatpush.bf16.msra.mxu1 %v3401_v0  ;;  %3561 = vmatpush.bf16.msra.mxu2 %v3401_v0  ;;  %v38_v2 = vld [vmem:[%s4822_s0 + $0x20] sm:$0xf]  ;;  %vm83_vm1 = vsmask.f32 7440  ;;  %v39_v3 = vld [vmem:[%s4822_s0 + $0x28] sm:$0xf] }
   0x8   :  { %3562 = vmatpush.bf16.msra.mxu3 %v3401_v0  ;;  %406 = vmatpush.bf16.msra.mxu0 %v3401_v0  ;;  %v3697_v4 = vld [vmem:[%s4822_s0 + $0x24] sm:$0x1]  ;;  %v3702_v5 = vld [vmem:[%s4822_s0 + $0x2c] sm:$0x1]  ;;  %v142_v7 = vshrl.u32 %v38_v2, 16  ;;  %v145_v8 = vshll.u32 %v38_v2, 16  ;;  %vm3723_vm2 = vmor %vm82_vm0, %vm83_vm1 }
   0x9   :  { %v3399_v6 = vld [vmem:[#allocation2 + $0x68] sm:$0xff]  ;;  %v151_v9 = vshll.u32 %v3697_v4, 16  ;;  %v156_v10 = vshrl.u32 %v39_v3, 16  ;;  %v42_v11 = vld [vmem:[%s4822_s0 + $0x50] sm:$0xf]  ;;  %v159_v12 = vshll.u32 %v39_v3, 16 }
   0xa   :  { %v165_v13 = vshll.u32 %v3702_v5, 16  ;;  %v43_v14 = vld [vmem:[%s4822_s0 + $0x58] sm:$0xf]  ;;  %v74_v15 = vld [vmem:[%s4822_s0 + $0x54] sm:$0x1]  ;;  %v144_v16 = vrot.slane %v142_v7, 4 }
   0xb   :  { %3563 = vmatpush.bf16.msra.mxu1 %v3400_v1  ;;  %3564 = vmatpush.bf16.msra.mxu2 %v3400_v1  ;;  %v147_v17 = vrot.slane %v145_v8, 5  ;;  %v153_v18 = vrot.slane %v151_v9, 5  ;;  %v158_v19 = vrot.slane %v156_v10, 4  ;;  %v75_v20 = vld [vmem:[%s4822_s0 + $0x5c] sm:$0x1]  ;;  %v161_v21 = vrot.slane %v159_v12, 5 }
   0xc   :  { %3565 = vmatpush.bf16.msra.mxu3 %v3400_v1  ;;  %407 = vmatpush.bf16.msra.mxu0 %v3400_v1  ;;  %v167_v22 = vrot.slane %v165_v13, 5  ;;  %v198_v23 = vshrl.u32 %v42_v11, 16  ;;  %v201_v24 = vshll.u32 %v42_v11, 16  ;;  %v207_v26 = vshll.u32 %v74_v15, 16  ;;  %v46_v29 = vld [vmem:[%s4822_s0 + $0x70] sm:$0xf] }
   0xd   :  { %v148_v25 = vor.u32 %v147_v17, %v144_v16  ;;  %v212_v27 = vshrl.u32 %v43_v14, 16  ;;  %v215_v28 = vshll.u32 %v43_v14, 16  ;;  %v162_v31 = vor.u32 %v161_v21, %v158_v19  ;;  %v78_v35 = vld [vmem:[%s4822_s0 + $0x74] sm:$0x1]  ;;  %v3398_v36 = vld [vmem:[#allocation2 + $0x60] sm:$0xff]  ;;  %v3397_v55 = vld [vmem:[#allocation2 + $0x58] sm:$0xff] }
   0xe   :  { %v200_v32 = vrot.slane %v198_v23, 4  ;;  %v203_v33 = vrot.slane %v201_v24, 5  ;;  %v221_v34 = vshll.u32 %v75_v20, 16  ;;  %v209_v38 = vrot.slane %v207_v26, 5  ;;  %v47_v47 = vld [vmem:[%s4822_s0 + $0x78] sm:$0xf] }
   0xf   :  { %3566 = vmatpush.bf16.msra.mxu1 %v3399_v6  ;;  %3567 = vmatpush.bf16.msra.mxu2 %v3399_v6  ;;  %v149_v37 = vrot.slane %v148_v25, 4  ;;  %v214_v39 = vrot.slane %v212_v27, 4  ;;  %v217_v40 = vrot.slane %v215_v28, 5  ;;  %v163_v41 = vrot.slane %v162_v31, 4  ;;  %v79_v48 = vld [vmem:[%s4822_s0 + $0x7c] sm:$0x1] }
  0x10   :  { %3568 = vmatpush.bf16.msra.mxu3 %v3399_v6  ;;  %408 = vmatpush.bf16.msra.mxu0 %v3399_v6  ;;  %v204_v42 = vor.u32 %v203_v33, %v200_v32  ;;  %v223_v43 = vrot.slane %v221_v34, 5  ;;  %v254_v44 = vshrl.u32 %v46_v29, 16  ;;  %v257_v49 = vshll.u32 %v46_v29, 16  ;;  %v34_v59 = vld [vmem:[%s4822_s0] sm:$0xf]  ;;  %v3396_v8 = vld [vmem:[#allocation2 + $0x50] sm:$0xff] }
  0x11   :  { %v154_v45 = vsel %vm3723_vm2, %v149_v37, %v153_v18  ;;  %v218_v46 = vor.u32 %v217_v40, %v214_v39  ;;  %v263_v50 = vshll.u32 %v78_v35, 16  ;;  %v168_v51 = vsel %vm3723_vm2, %v163_v41, %v167_v22  ;;  %v3752_v0 = vld [vmem:[%s4822_s0 + $0x4] sm:$0x1]  ;;  %v35_v7 = vld [vmem:[%s4822_s0 + $0x8] sm:$0xf]  ;;  %s3656_s19 = smov [#allocation5]  }
  0x12   :  { %v3740_v52 = vunpack.c.l.b16 %v154_v45  ;;  %v205_v53 = vrot.slane %v204_v42, 4  ;;  %v256_v54 = vrot.slane %v254_v44, 4  ;;  %v3742_v56 = vunpack.c.l.b16 %v168_v51  ;;  %v3766_v14 = vld [vmem:[%s4822_s0 + $0xc] sm:$0x1]  ;;  %v40_v22 = vld [vmem:[%s4822_s0 + $0x30] sm:$0xf] }
  0x13   :  { %3569 = vmatpush.bf16.msra.mxu1 %v3398_v36  ;;  %3570 = vmatpush.bf16.msra.mxu2 %v3398_v36  ;;  %v219_v57 = vrot.slane %v218_v46, 4  ;;  %v259_v58 = vrot.slane %v257_v49, 5  ;;  %v268_v61 = vshrl.u32 %v47_v47, 16  ;;  %v271_v62 = vshll.u32 %v47_v47, 16  ;;  %v41_v23 = vld [vmem:[%s4822_s0 + $0x38] sm:$0xf] }
  0x14   :  { %3571 = vmatpush.bf16.msra.mxu3 %v3398_v36  ;;  %409 = vmatpush.bf16.msra.mxu0 %v3398_v36  ;;  %v210_v60 = vsel %vm3723_vm2, %v205_v53, %v209_v38  ;;  %v277_v63 = vshll.u32 %v79_v48, 16  ;;  %v344_v1 = vpack.c.b16 %v3742_v56, %v3740_v52  ;;  %v265_v6 = vrot.slane %v263_v50, 5  ;;  %v3782_v28 = vld [vmem:[%s4822_s0 + $0x34] sm:$0x1]  ;;  %v3395_v34 = vld [vmem:[#allocation2 + $0x48] sm:$0xff]  ;;  %s2803_s22 = sshll.u32 %s3656_s19, 4  ;;  %s2804_s22 = int_to_ptr.vmem [resolvable:$true] %s2803_s22 }
  0x15   :  { %v224_v2 = vsel %vm3723_vm2, %v219_v57, %v223_v43  ;;  %v260_v3 = vor.u32 %v259_v58, %v256_v54  ;;  %v3761_v9 = vunpack.c.l.b16 %v210_v60  ;;  %v270_v10 = vrot.slane %v268_v61, 4  ;;  %v3792_v41 = vld [vmem:[%s4822_s0 + $0x3c] sm:$0x1]  ;;  %v44_v48 = vld [vmem:[%s4822_s0 + $0x60] sm:$0xf]  ;;  %v3432_v52 = vld [vmem:[#allocation2 + $0x130] sm:$0xff] }
  0x16   :  { %v273_v11 = vrot.slane %v271_v62, 5  ;;  %v279_v12 = vrot.slane %v277_v63, 5  ;;  %v86_v15 = vshrl.u32 %v34_v59, 16  ;;  %v89_v16 = vshll.u32 %v34_v59, 16  ;;  %v45_v54 = vld [vmem:[%s4822_s0 + $0x68] sm:$0xf] }
  0x17   :  { %3572 = vmatpush.bf16.msra.mxu1 %v3397_v55  ;;  %3573 = vmatpush.bf16.msra.mxu2 %v3397_v55  ;;  %v261_v13 = vrot.slane %v260_v3, 4  ;;  %v95_v17 = vshll.u32 %v3752_v0, 16  ;;  %v3769_v18 = vunpack.c.l.b16 %v224_v2  ;;  %v100_v20 = vshrl.u32 %v35_v7, 16  ;;  %v3813_v61 = vld [vmem:[%s4822_s0 + $0x64] sm:$0x1]  ;;  %v3407_v56 = vld [vmem:[#allocation2 + $0xa8] sm:$0xff] }
  0x18   :  { %3574 = vmatpush.bf16.msra.mxu3 %v3397_v55  ;;  %410 = vmatpush.bf16.msra.mxu0 %v3397_v55  ;;  %v274_v19 = vor.u32 %v273_v11, %v270_v10  ;;  %v103_v21 = vshll.u32 %v35_v7, 16  ;;  %v88_v25 = vrot.slane %v86_v15, 4  ;;  %v91_v26 = vrot.slane %v89_v16, 5  ;;  %v3394_v55 = vld [vmem:[#allocation2 + $0x40] sm:$0xff]  ;;  %v3409_v7 = vld [vmem:[#allocation2 + $0xb8] sm:$0xff]  ;;  %s2805_s24 = sshll.u32 %s4826_s4, 4  ;;  %s2806_s24 = int_to_ptr.hbm [resolvable:$true] %s2805_s24 }
  0x19   :  { %v266_v24 = vsel %vm3723_vm2, %v261_v13, %v265_v6  ;;  %v97_v27 = vrot.slane %v95_v17, 5  ;;  %v102_v32 = vrot.slane %v100_v20, 4  ;;  %v109_v36 = vshll.u32 %v3766_v14, 16  ;;  %v3822_v11 = vld [vmem:[%s4822_s0 + $0x6c] sm:$0x1]  ;;  %v3425_v13 = vld [vmem:[#allocation2 + $0xf8] sm:$0xff] }
  0x1a   :  { %v275_v29 = vrot.slane %v274_v19, 4  ;;  %v3784_v31 = vunpack.c.l.b16 %v266_v24  ;;  %v105_v33 = vrot.slane %v103_v21, 5  ;;  %v92_v35 = vor.u32 %v91_v26, %v88_v25  ;;  %v80_v24 = vld [vmem:[%s4822_s0 + $0x84] sm:$0x1]  ;;  %v3433_v25 = vld [vmem:[#allocation2 + $0x138] sm:$0xff] }
  0x1b   :  { %3575 = vmatpush.bf16.msra.mxu1 %v3396_v8  ;;  %3576 = vmatpush.bf16.msra.mxu2 %v3396_v8  ;;  %v170_v37 = vshrl.u32 %v40_v22, 16  ;;  %v173_v38 = vshll.u32 %v40_v22, 16  ;;  %v179_v42 = vshll.u32 %v3782_v28, 16  ;;  %v184_v43 = vshrl.u32 %v41_v23, 16 }
  0x1c   :  { %3577 = vmatpush.bf16.msra.mxu3 %v3396_v8  ;;  %411 = vmatpush.bf16.msra.mxu0 %v3396_v8  ;;  %v280_v39 = vsel %vm3723_vm2, %v275_v29, %v279_v12  ;;  %v106_v40 = vor.u32 %v105_v33, %v102_v32  ;;  %v93_v45 = vrot.slane %v92_v35, 4  ;;  %v111_v46 = vrot.slane %v109_v36, 5  ;;  %v3393_v8 = vld [vmem:[#allocation2 + $0x38] sm:$0xff]  ;;  %v3408_v32 = vld [vmem:[#allocation2 + $0xb0] sm:$0xff] }
  0x1d   :  { %v3795_v44 = vunpack.c.l.b16 %v280_v39  ;;  %v172_v47 = vrot.slane %v170_v37, 4  ;;  %v346_v49 = vpack.c.b16 %v3769_v18, %v3761_v9  ;;  %v175_v51 = vrot.slane %v173_v38, 5  ;;  %v3392_v33 = vld [vmem:[#allocation2 + $0x30] sm:$0xff] }
  0x1e   :  { %v107_v50 = vrot.slane %v106_v40, 4  ;;  %v3802_v53 = vrot.slane %v179_v42, 5  ;;  %v98_v57 = vsel %vm3723_vm2, %v93_v45, %v97_v27  ;;  %v186_v58 = vrot.slane %v184_v43, 4  ;;  %v3424_v43 = vld [vmem:[#allocation2 + $0xf0] sm:$0xff] }
  0x1f   :  { %3578 = vmatpush.bf16.msra.mxu1 %v3395_v34  ;;  %3579 = vmatpush.bf16.msra.mxu2 %v3395_v34  ;;  %v187_v59 = vshll.u32 %v41_v23, 16  ;;  %v193_v60 = vshll.u32 %v3792_v41, 16  ;;  %v326_v63 = vunpack.c.l.b16 %v98_v57  ;;  %v176_v2 = vor.u32 %v175_v51, %v172_v47  ;;  %v48_v23 = vld [vmem:[%s4822_s0 + $0x80] sm:$0xf]  ;;  %v81_v47 = vld [vmem:[%s4822_s0 + $0x8c] sm:$0x1] }
  0x20   :  { %3580 = vmatpush.bf16.msra.mxu3 %v3395_v34  ;;  %412 = vmatpush.bf16.msra.mxu0 %v3395_v34  ;;  %v112_v62 = vsel %vm3723_vm2, %v107_v50, %v111_v46  ;;  %v226_v3 = vshrl.u32 %v44_v48, 16  ;;  %v348_v6 = vpack.c.b16 %v3795_v44, %v3784_v31  ;;  %v229_v12 = vshll.u32 %v44_v48, 16  ;;  %v49_v31 = vld [vmem:[%s4822_s0 + $0x88] sm:$0xf]  ;;  %v36_v51 = vld [vmem:[%s4822_s0 + $0x10] sm:$0xf] }
  0x21   :  { %v327_v9 = vunpack.c.l.b16 %v112_v62  ;;  %v189_v10 = vrot.slane %v187_v59, 5  ;;  %v177_v15 = vrot.slane %v176_v2, 4  ;;  %v235_v17 = vshll.u32 %v3813_v61, 16  ;;  %v3854_v59 = vld [vmem:[%s4822_s0 + $0x14] sm:$0x1] }
  0x22   :  { %v228_v16 = vrot.slane %v226_v3, 4  ;;  %v240_v18 = vshrl.u32 %v45_v54, 16  ;;  %v231_v21 = vrot.slane %v229_v12, 5  ;;  %v243_v22 = vshll.u32 %v45_v54, 16  ;;  %v37_v3 = vld [vmem:[%s4822_s0 + $0x18] sm:$0xf] }
  0x23   :  { %3581 = vmatpush.bf16.msra.mxu1 %v3394_v55  ;;  %3582 = vmatpush.bf16.msra.mxu2 %v3394_v55  ;;  %v342_v19 = vpack.c.b16 %v327_v9, %v326_v63  ;;  %v190_v20 = vor.u32 %v189_v10, %v186_v58  ;;  %v195_v26 = vrot.slane %v193_v60, 5  ;;  %v249_v29 = vshll.u32 %v3822_v11, 16  ;;  %v3423_v10 = vld [vmem:[#allocation2 + $0xe8] sm:$0xff] }
  0x24   :  { %3583 = vmatpush.bf16.msra.mxu3 %v3394_v55  ;;  %413 = vmatpush.bf16.msra.mxu0 %v3394_v55  ;;  %v242_v27 = vrot.slane %v240_v18, 4  ;;  %v182_v34 = vsel %vm3723_vm2, %v177_v15, %v3802_v53  ;;  %v232_v36 = vor.u32 %v231_v21, %v228_v16  ;;  %v245_v37 = vrot.slane %v243_v22, 5  ;;  %v3391_v53 = vld [vmem:[#allocation2 + $0x28] sm:$0xff]  ;;  %v3869_v21 = vld [vmem:[%s4822_s0 + $0x1c] sm:$0x1] }
  0x25   :  { %v191_v35 = vrot.slane %v190_v20, 4  ;;  %v237_v38 = vrot.slane %v235_v17, 5  ;;  %v282_v39 = vshrl.u32 %v48_v23, 16  ;;  %v285_v40 = vshll.u32 %v48_v23, 16  ;;  %v3431_v12 = vld [vmem:[#allocation2 + $0x128] sm:$0xff] }
  0x26   :  { %424 = vmatmul.bf16.vlgmr.msra.gmra.mxu1 %v344_v1  ;;  %434 = vmatmul.bf16.vlgmr.msra.gmra.mxu2 %v346_v49  ;;  %v291_v42 = vshll.u32 %v80_v24, 16  ;;  %v233_v44 = vrot.slane %v232_v36, 4  ;;  %v246_v45 = vor.u32 %v245_v37, %v242_v27  ;;  %v251_v46 = vrot.slane %v249_v29, 5  ;;  %v3430_v36 = vld [vmem:[#allocation2 + $0x120] sm:$0xff] }
  0x27   :  { %812 = vmatpush.bf16.msrb.mxu2 %v3409_v7  ;;  %551 = vmatpush.bf16.msrb.mxu1 %v3393_v8  ;;  %v296_v48 = vshrl.u32 %v49_v31, 16  ;;  %v3844_v1 = vunpack.c.l.b16 %v182_v34  ;;  %v284_v49 = vrot.slane %v282_v39, 4  ;;  %v287_v50 = vrot.slane %v285_v40, 5 }
  0x28   :  { %444 = vmatmul.bf16.vlgmr.msra.gmra.mxu3 %v348_v6  ;;  %414 = vmatmul.bf16.vlgmr.msra.gmra.mxu0 %v342_v19  ;;  %v196_v54 = vsel %vm3723_vm2, %v191_v35, %v195_v26  ;;  %v247_v55 = vrot.slane %v246_v45, 4  ;;  %v299_v58 = vshll.u32 %v49_v31, 16  ;;  %v238_v60 = vsel %vm3723_vm2, %v233_v44, %v237_v38  ;;  %v3390_v19 = vld [vmem:[#allocation2 + $0x20] sm:$0xff]  ;;  %v3389_v44 = vld [vmem:[#allocation2 + $0x18] sm:$0xff] }
  0x29   :  { %1007 = vmatpush.bf16.msrb.mxu3 %v3425_v13  ;;  %1425 = vmatpush.bf16.msrb.mxu0 %v3433_v25  ;;  %v298_v57 = vrot.slane %v296_v48, 4  ;;  %v288_v62 = vor.u32 %v287_v50, %v284_v49  ;;  %v293_v63 = vrot.slane %v291_v42, 5  ;;  %v305_v2 = vshll.u32 %v81_v47, 16  ;;  %v3406_v13 = vld [vmem:[#allocation2 + $0xa0] sm:$0xff]  ;;  %v601_v49 = vld [vmem:[%s4822_s0 + $0x8] sm:$0xe] }
  0x2a   :  { %v252_v6 = vsel %vm3723_vm2, %v247_v55, %v251_v46  ;;  %v301_v7 = vrot.slane %v299_v58, 5  ;;  %v114_v8 = vshrl.u32 %v36_v51, 16  ;;  %v117_v9 = vshll.u32 %v36_v51, 16  ;;  %v3422_v35 = vld [vmem:[#allocation2 + $0xe0] sm:$0xff]  ;;  %v3892_v51 = vld [vmem:[%s4822_s0 + $0xc] sm:$0x1] }
  0x2b   :  { %813 = vmatpush.bf16.msrb.mxu2 %v3408_v32  ;;  %552 = vmatpush.bf16.msrb.mxu1 %v3392_v33  ;;  %v3863_v15 = vunpack.c.l.b16 %v196_v54  ;;  %v289_v16 = vrot.slane %v288_v62, 4  ;;  %v307_v17 = vrot.slane %v305_v2, 5  ;;  %v123_v18 = vshll.u32 %v3854_v59, 16  ;;  %v600_v46 = vld [vmem:[%s4822_s0] sm:$0xe]  ;;  %v3421_v55 = vld [vmem:[#allocation2 + $0xd8] sm:$0xff] }
  0x2c   :  { %v302_v20 = vor.u32 %v301_v7, %v298_v57  ;;  %v116_v22 = vrot.slane %v114_v8, 4  ;;  %v119_v23 = vrot.slane %v117_v9, 5  ;;  %v128_v24 = vshrl.u32 %v37_v3, 16  ;;  %v3429_v58 = vld [vmem:[#allocation2 + $0x118] sm:$0xff]  ;;  %v3901_v7 = vld [vmem:[%s4822_s0 + $0x14] sm:$0x1] }
  0x2d   :  { %1008 = vmatpush.bf16.msrb.mxu3 %v3424_v43  ;;  %1426 = vmatpush.bf16.msrb.mxu0 %v3432_v52  ;;  %v336_v25 = vunpack.c.l.b16 %v238_v60  ;;  %v337_v26 = vunpack.c.l.b16 %v252_v6  ;;  %v294_v27 = vsel %vm3723_vm2, %v289_v16, %v293_v63  ;;  %v131_v29 = vshll.u32 %v37_v3, 16  ;;  %v3405_v43 = vld [vmem:[#allocation2 + $0x98] sm:$0xff]  ;;  %v3404_v60 = vld [vmem:[#allocation2 + $0x90] sm:$0xff] }
  0x2e   :  { %v303_v31 = vrot.slane %v302_v20, 4  ;;  %v120_v32 = vor.u32 %v119_v23, %v116_v22  ;;  %v125_v33 = vrot.slane %v123_v18, 5  ;;  %v130_v34 = vrot.slane %v128_v24, 4  ;;  %v3388_v3 = vld [vmem:[#allocation2 + $0x10] sm:$0xff] }
  0x2f   :  { %814 = vmatpush.bf16.msrb.mxu2 %v3407_v56  ;;  %553 = vmatpush.bf16.msrb.mxu1 %v3391_v53  ;;  %v340_v37 = vunpack.c.l.b16 %v294_v27  ;;  %v133_v38 = vrot.slane %v131_v29, 5  ;;  %v137_v39 = vshll.u32 %v3869_v21, 16  ;;  %v345_v40 = vpack.c.b16 %v3863_v15, %v3844_v1  ;;  %v3042_v1 = vld [vmem:[%s4822_s0 + $0x8] sm:$0xf]  ;;  %v3044_v53 = vld [vmem:[%s4822_s0 + $0x10] sm:$0xf] }
  0x30   :  { %v308_v42 = vsel %vm3723_vm2, %v303_v31, %v307_v17  ;;  %v121_v45 = vrot.slane %v120_v32, 4  ;;  %v347_v47 = vpack.c.b16 %v337_v26, %v336_v25  ;;  %vm648_vm3 = vcmask 1042432   ;;  %v3420_v20 = vld [vmem:[#allocation2 + $0xd0] sm:$0xff]  ;;  %v3403_v25 = vld [vmem:[#allocation2 + $0x88] sm:$0xff] }
  0x31   :  { %1009 = vmatpush.bf16.msrb.mxu3 %v3423_v10  ;;  %1427 = vmatpush.bf16.msrb.mxu0 %v3431_v12  ;;  %v341_v48 = vunpack.c.l.b16 %v308_v42  ;;  %v134_v52 = vor.u32 %v133_v38, %v130_v34  ;;  %v139_v56 = vrot.slane %v137_v39, 5  ;;  %vm649_vm4 = vcmask 1046532   ;;  %v3428_v22 = vld [vmem:[#allocation2 + $0x110] sm:$0xff]  ;;  %v3387_v26 = vld [vmem:[#allocation2 + $0x8] sm:$0xff]  ;;  %v3402_v39 = vld [vmem:[#allocation2 + $0x80] sm:$0xff] }
  0x32   :  { %v126_v50 = vsel %vm3723_vm2, %v121_v45, %v125_v33  ;;  %v2914_v62 = vrot.slane %v600_v46, 9  ;;  %v653_v63 = vrot.slane %v3752_v0, 5  ;;  %v2915_v6 = vrot.slane %v601_v49, 9  ;;  %vm3909_vm5 = vmor %vm648_vm3, %vm649_vm4  ;;  %v3427_v38 = vld [vmem:[#allocation2 + $0x108] sm:$0xff]  ;;  %v3386_v42 = vld [vmem:[#allocation2] sm:$0xff] }
  0x33   :  { %815 = vmatpush.bf16.msrb.mxu2 %v3406_v13  ;;  %554 = vmatpush.bf16.msrb.mxu1 %v3390_v19  ;;  %v349_v54 = vpack.c.b16 %v341_v48, %v340_v37  ;;  %v135_v57 = vrot.slane %v134_v52, 4  ;;  %v328_v2 = vunpack.c.l.b16 %v126_v50  ;;  %v1105_v8 = vshrl.u32 %v3042_v1, 16  ;;  %v3419_v37 = vld [vmem:[#allocation2 + $0xc8] sm:$0xff]  ;;  %v3048_v45 = vld [vmem:[%s4822_s0 + $0x20] sm:$0xf]  ;;  %v3457_v52 = vld [vmem:[#allocation2 + $0x1b8] sm:$0xff] }
  0x34   :  { %v1108_v9 = vshll.u32 %v3042_v1, 16  ;;  %v657_v12 = vrot.slane %v3766_v14, 5  ;;  %v1114_v0 = vshll.u32 %v3892_v51, 16  ;;  %v1119_v13 = vshrl.u32 %v3044_v53, 16  ;;  %v3378_v46 = vld [vmem:[%s4822_s0 + $0x4] sm:$0xf0] }
  0x35   :  { %1010 = vmatpush.bf16.msrb.mxu3 %v3422_v35  ;;  %1428 = vmatpush.bf16.msrb.mxu0 %v3430_v36  ;;  %v140_v10 = vsel %vm3723_vm2, %v135_v57, %v139_v56  ;;  %v1107_v17 = vrot.slane %v1105_v8, 4  ;;  %v1122_v19 = vshll.u32 %v3044_v53, 16  ;;  %v1128_v14 = vshll.u32 %v3901_v7, 16  ;;  %v3046_v36 = vld [vmem:[%s4822_s0 + $0x18] sm:$0xf] }
  0x36   :  { %429 = vmatmul.bf16.gmra.mxu1 %v345_v40  ;;  %439 = vmatmul.bf16.gmra.mxu2 %v347_v47  ;;  %v329_v15 = vunpack.c.l.b16 %v140_v10  ;;  %v1110_v18 = vrot.slane %v1108_v9, 5  ;;  %v1121_v23 = vrot.slane %v1119_v13, 4  ;;  %v654_v31 = vsel %vm3909_vm5, %v2914_v62, %v653_v63  ;;  %v3441_v56 = vld [vmem:[#allocation2 + $0x178] sm:$0xff]  ;;  %v2980_v1 = vld [vmem:[%s4822_s0 + $0x8] sm:$0xf] }
  0x37   :  { %816 = vmatpush.bf16.msrb.mxu2 %v3405_v43  ;;  %555 = vmatpush.bf16.msrb.mxu1 %v3389_v44  ;;  %v1124_v29 = vrot.slane %v1122_v19, 5  ;;  %v658_v32 = vsel %vm3909_vm5, %v2915_v6, %v657_v12  ;;  %v1116_v34 = vrot.slane %v1114_v0, 5  ;;  %v1130_v40 = vrot.slane %v1128_v14, 5  ;;  %v2852_v43 = vld [vmem:[%s4822_s0] sm:$0xf] }
  0x38   :  { %449 = vmatmul.bf16.gmra.mxu3 %v349_v54  ;;  %v343_v24 = vpack.c.b16 %v329_v15, %v328_v2  ;;  %v1111_v27 = vor.u32 %v1110_v18, %v1107_v17  ;;  %v732_v47 = vunpack.c.l.b16 %v654_v31  ;;  %v733_v48 = vunpack.c.l.b16 %v658_v32  ;;  %v3410_v50 = vld [vmem:[%s4822_s0 + $0xc] sm:$0xf0]  ;;  %v3418_v54 = vld [vmem:[#allocation2 + $0xc0] sm:$0xff]  ;;  %v605_v8 = vld [vmem:[%s4822_s0 + $0x28] sm:$0xe] }
  0x39   :  { %1011 = vmatpush.bf16.msrb.mxu3 %v3421_v55  ;;  %1429 = vmatpush.bf16.msrb.mxu0 %v3429_v58  ;;  %v1125_v35 = vor.u32 %v1124_v29, %v1121_v23  ;;  %v1133_v49 = vshrl.u32 %v3046_v36, 16  ;;  %v3426_v55 = vld [vmem:[#allocation2 + $0x100] sm:$0xff]  ;;  %v3465_v58 = vld [vmem:[#allocation2 + $0x1f8] sm:$0xff]  ;;  %v1147_v62 = vshrl.u32 %v3048_v45, 16  ;;  %v1150_v63 = vshll.u32 %v3048_v45, 16  ;;  %v3456_v18 = vld [vmem:[#allocation2 + $0x1b0] sm:$0xff] }
  0x3a   :  { %419 = vmatmul.bf16.gmra.mxu0 %v343_v24  ;;  %v1112_v33 = vrot.slane %v1111_v27, 4  ;;  %v2853_v2 = vor.u32 %v3378_v46, %v2852_v43  ;;  %v604_v6 = vld [vmem:[%s4822_s0 + $0x20] sm:$0xe]  ;;  %v748_v9 = vpack.c.b16 %v733_v48, %v732_v47  ;;  %v2981_v10 = vor.u32 %v3410_v50, %v2980_v1  ;;  %v602_v0 = vld [vmem:[%s4822_s0 + $0x10] sm:$0xe]  ;;  %v3463_v47 = vld [vmem:[#allocation2 + $0x1e8] sm:$0xff] }
  0x3b   :  { %817 = vmatpush.bf16.msrb.mxu2 %v3404_v60  ;;  %556 = vmatpush.bf16.msrb.mxu1 %v3388_v3  ;;  %v1126_v44 = vrot.slane %v1125_v35, 4  ;;  %v1136_v60 = vshll.u32 %v3046_v36, 16  ;;  %v3473_v3 = vld [vmem:[#allocation2 + $0x238] sm:$0xff]  ;;  %v1135_v15 = vrot.slane %v1133_v49, 4  ;;  %v2919_v23 = vrot.slane %v605_v8, 9  ;;  %v3439_v48 = vld [vmem:[#allocation2 + $0x168] sm:$0xff] }
  0x3c   :  { %v1117_v53 = vsel %vm3723_vm2, %v1112_v33, %v1116_v34  ;;  %v603_v13 = vld [vmem:[%s4822_s0 + $0x18] sm:$0xe]  ;;  %v3955_v19 = vld [vmem:[%s4822_s0 + $0x1c] sm:$0x1]  ;;  %v1149_v24 = vrot.slane %v1147_v62, 4  ;;  %v673_v27 = vrot.slane %v3702_v5, 5 }
  0x3d   :  { %1012 = vmatpush.bf16.msrb.mxu3 %v3420_v20  ;;  %1430 = vmatpush.bf16.msrb.mxu0 %v3428_v22  ;;  %v1131_v57 = vsel %vm3723_vm2, %v1126_v44, %v1130_v40  ;;  %v1345_v12 = vunpack.c.l.b16 %v1117_v53  ;;  %v2918_v20 = vrot.slane %v604_v6, 9  ;;  %v669_v22 = vrot.slane %v3697_v4, 5  ;;  %v3963_v32 = vld [vmem:[%s4822_s0 + $0x24] sm:$0x1]  ;;  %v3464_v4 = vld [vmem:[#allocation2 + $0x1f0] sm:$0xff] }
  0x3e   :  { %v1346_v17 = vunpack.c.l.b16 %v1131_v57  ;;  %v1138_v14 = vrot.slane %v1136_v60, 5  ;;  %v2916_v29 = vrot.slane %v602_v0, 9  ;;  %v661_v31 = vrot.slane %v3854_v59, 5  ;;  %v3472_v33 = vld [vmem:[#allocation2 + $0x230] sm:$0xff]  ;;  %v3050_v53 = vld [vmem:[%s4822_s0 + $0x28] sm:$0xf] }
  0x3f   :  { %818 = vmatpush.bf16.msrb.mxu2 %v3403_v25  ;;  %557 = vmatpush.bf16.msrb.mxu1 %v3387_v26  ;;  %v1152_v25 = vrot.slane %v1150_v63, 5  ;;  %v3440_v26 = vld [vmem:[#allocation2 + $0x170] sm:$0xff]  ;;  %v670_v34 = vsel %vm3909_vm5, %v2918_v20, %v669_v22  ;;  %v2917_v35 = vrot.slane %v603_v13, 9  ;;  %v665_v5 = vrot.slane %v3869_v21, 5  ;;  %v3379_v60 = vld [vmem:[%s4822_s0 + $0x14] sm:$0xf0] }
  0x40   :  { %v674_v36 = vsel %vm3909_vm5, %v2919_v23, %v673_v27  ;;  %v1361_v59 = vpack.c.b16 %v1346_v17, %v1345_v12  ;;  %v1139_v40 = vor.u32 %v1138_v14, %v1135_v15  ;;  %v1156_v44 = vshll.u32 %v3963_v32, 16  ;;  %v2984_v62 = vld [vmem:[%s4822_s0 + $0x18] sm:$0xf]  ;;  %v3411_v63 = vld [vmem:[%s4822_s0 + $0x1c] sm:$0xf0] }
  0x41   :  { %1013 = vmatpush.bf16.msrb.mxu3 %v3419_v37  ;;  %1431 = vmatpush.bf16.msrb.mxu0 %v3427_v38  ;;  %v736_v37 = vunpack.c.l.b16 %v670_v34  ;;  %v737_v38 = vunpack.c.l.b16 %v674_v36  ;;  %v1153_v43 = vor.u32 %v1152_v25, %v1149_v24  ;;  %v662_v21 = vsel %vm3909_vm5, %v2916_v29, %v661_v31  ;;  %v606_v15 = vld [vmem:[%s4822_s0 + $0x30] sm:$0xe]  ;;  %v607_v17 = vld [vmem:[%s4822_s0 + $0x38] sm:$0xe]  ;;  %v3454_v36 = vld [vmem:[#allocation2 + $0x1a0] sm:$0xff] }
  0x42   :  { %v666_v46 = vsel %vm3909_vm5, %v2917_v35, %v665_v5  ;;  %v1158_v50 = vrot.slane %v1156_v44, 5  ;;  %v2985_v13 = vor.u32 %v3411_v63, %v2984_v62  ;;  %v677_v20 = vrot.slane %v3782_v28, 5  ;;  %v4020_v28 = vld [vmem:[%s4822_s0 + $0x34] sm:$0x1]  ;;  %v3470_v44 = vld [vmem:[#allocation2 + $0x220] sm:$0xff] }
  0x43   :  { %819 = vmatpush.bf16.msrb.mxu2 %v3402_v39  ;;  %558 = vmatpush.bf16.msrb.mxu1 %v3386_v42  ;;  %v3455_v39 = vld [vmem:[#allocation2 + $0x1a8] sm:$0xff]  ;;  %v1142_v42 = vshll.u32 %v3955_v19, 16  ;;  %v3972_v45 = vpack.c.b16 %v737_v38, %v736_v37  ;;  %v1154_v1 = vrot.slane %v1153_v43, 4  ;;  %v735_v57 = vunpack.c.l.b16 %v666_v46  ;;  %v3438_v43 = vld [vmem:[#allocation2 + $0x160] sm:$0xff] }
  0x44   :  { %v2921_v22 = vrot.slane %v607_v17, 9  ;;  %v681_v23 = vrot.slane %v3792_v41, 5 }
  0x45   :  { %1014 = vmatpush.bf16.msrb.mxu3 %v3418_v54  ;;  %1432 = vmatpush.bf16.msrb.mxu0 %v3426_v55  ;;  %v1144_v49 = vrot.slane %v1142_v42, 5  ;;  %v2856_v54 = vld [vmem:[%s4822_s0 + $0x10] sm:$0xf]  ;;  %v734_v55 = vunpack.c.l.b16 %v662_v21  ;;  %v1159_v8 = vsel %vm3723_vm2, %v1154_v1, %v1158_v50  ;;  %v3462_v42 = vld [vmem:[#allocation2 + $0x1e0] sm:$0xff] }
  0x46   :  { %559 = vmatmul.bf16.vlgmr.msrb.gmra.mxu1 %v2853_v2  ;;  %820 = vmatmul.bf16.vlgmr.msrb.gmra.mxu2 %v748_v9  ;;  %v1161_v2 = vshrl.u32 %v3050_v53, 16  ;;  %v2857_v12 = vor.u32 %v3379_v60, %v2856_v54  ;;  %v1348_v24 = vunpack.c.l.b16 %v1159_v8  ;;  %v3412_v54 = vld [vmem:[%s4822_s0 + $0x2c] sm:$0xf0] }
  0x47   :  { %1894 = vmatpush.bf16.msra.mxu2 %v3457_v52  ;;  %1699 = vmatpush.bf16.msra.mxu1 %v3441_v56  ;;  %v3471_v52 = vld [vmem:[#allocation2 + $0x228] sm:$0xff]  ;;  %v1140_v56 = vrot.slane %v1139_v40, 4  ;;  %v749_v0 = vpack.c.b16 %v735_v57, %v734_v55  ;;  %v3054_v40 = vld [vmem:[%s4822_s0 + $0x38] sm:$0xf] }
  0x48   :  { %1015 = vmatmul.bf16.vlgmr.msrb.gmra.mxu3 %v2981_v10  ;;  %v1163_v25 = vrot.slane %v1161_v2, 4  ;;  %v1189_v1 = vshrl.u32 %v3054_v40, 16  ;;  %v1192_v50 = vshll.u32 %v3054_v40, 16 }
  0x49   :  { %2312 = vmatpush.bf16.msra.mxu3 %v3465_v58  ;;  %2586 = vmatpush.bf16.msra.mxu0 %v3473_v3  ;;  %v3052_v58 = vld [vmem:[%s4822_s0 + $0x30] sm:$0xf]  ;;  %v1164_v3 = vshll.u32 %v3050_v53, 16  ;;  %v1145_v6 = vsel %vm3723_vm2, %v1140_v56, %v1144_v49  ;;  %v2860_v56 = vld [vmem:[%s4822_s0 + $0x20] sm:$0xf] }
  0x4a   :  { %1433 = vmatmul.bf16.vlgmr.msrb.gmra.mxu0 %v1361_v59  ;;  %v1175_v9 = vshrl.u32 %v3052_v58, 16  ;;  %v1178_v10 = vshll.u32 %v3052_v58, 16  ;;  %v1347_v14 = vunpack.c.l.b16 %v1145_v6  ;;  %v3380_v49 = vld [vmem:[%s4822_s0 + $0x24] sm:$0xf0]  ;;  %v1191_v2 = vrot.slane %v1189_v1, 4 }
  0x4b   :  { %1895 = vmatpush.bf16.msra.mxu2 %v3456_v18  ;;  %1700 = vmatpush.bf16.msra.mxu1 %v3440_v26  ;;  %v2920_v18 = vrot.slane %v606_v15, 9  ;;  %v1166_v26 = vrot.slane %v1164_v3, 5  ;;  %v2988_v53 = vld [vmem:[%s4822_s0 + $0x28] sm:$0xf]  ;;  %v2861_v62 = vor.u32 %v3380_v49, %v2860_v56  ;;  %v1194_v3 = vrot.slane %v1192_v50, 5 }
  0x4c   :  { %v1177_v27 = vrot.slane %v1175_v9, 4  ;;  %v1180_v29 = vrot.slane %v1178_v10, 5  ;;  %v1362_v35 = vpack.c.b16 %v1348_v24, %v1347_v14  ;;  %v2989_v63 = vor.u32 %v3412_v54, %v2988_v53  ;;  %v4092_v1 = vld [vmem:[%s4822_s0 + $0x5c] sm:$0x1]  ;;  %v4097_v50 = vld [vmem:[%s4822_s0 + $0x64] sm:$0x1] }
  0x4d   :  { %2313 = vmatpush.bf16.msra.mxu3 %v3464_v4  ;;  %2587 = vmatpush.bf16.msra.mxu0 %v3472_v33  ;;  %v678_v31 = vsel %vm3909_vm5, %v2920_v18, %v677_v20  ;;  %v682_v4 = vsel %vm3909_vm5, %v2921_v22, %v681_v23  ;;  %v4015_v33 = vld [vmem:[%s4822_s0 + $0x2c] sm:$0x1]  ;;  %v1167_v37 = vor.u32 %v1166_v26, %v1163_v25  ;;  %v3453_v22 = vld [vmem:[#allocation2 + $0x198] sm:$0xff] }
  0x4e   :  { %v738_v41 = vunpack.c.l.b16 %v678_v31  ;;  %v739_v34 = vunpack.c.l.b16 %v682_v4  ;;  %v1170_v59 = vshll.u32 %v4015_v33, 16  ;;  %v1181_v38 = vor.u32 %v1180_v29, %v1177_v27  ;;  %v3461_v26 = vld [vmem:[#allocation2 + $0x1d8] sm:$0xff]  ;;  %v3060_v31 = vld [vmem:[%s4822_s0 + $0x60] sm:$0xf]  ;;  %v2864_v4 = vld [vmem:[%s4822_s0 + $0x30] sm:$0xf] }
  0x4f   :  { %1896 = vmatpush.bf16.msra.mxu2 %v3455_v39  ;;  %1701 = vmatpush.bf16.msra.mxu1 %v3439_v48  ;;  %v1184_v39 = vshll.u32 %v4020_v28, 16  ;;  %v1168_v21 = vrot.slane %v1167_v37, 4  ;;  %v3437_v27 = vld [vmem:[#allocation2 + $0x158] sm:$0xff]  ;;  %v1234_v40 = vshll.u32 %v3060_v31, 16 }
  0x50   :  { %v4022_v5 = vpack.c.b16 %v739_v34, %v738_v41  ;;  %v1172_v46 = vrot.slane %v1170_v59, 5  ;;  %v3469_v29 = vld [vmem:[#allocation2 + $0x218] sm:$0xff] }
  0x51   :  { %2314 = vmatpush.bf16.msra.mxu3 %v3463_v47  ;;  %2588 = vmatpush.bf16.msra.mxu0 %v3471_v52  ;;  %v1182_v47 = vrot.slane %v1181_v38, 4  ;;  %v1186_v48 = vrot.slane %v1184_v39, 5  ;;  %v3056_v52 = vld [vmem:[%s4822_s0 + $0x40] sm:$0xf]  ;;  %v3381_v41 = vld [vmem:[%s4822_s0 + $0x34] sm:$0xf0] }
  0x52   :  { %v1203_v55 = vshrl.u32 %v3056_v52, 16  ;;  %v1206_v57 = vshll.u32 %v3056_v52, 16  ;;  %v1173_v58 = vsel %vm3723_vm2, %v1168_v21, %v1172_v46  ;;  %v2992_v59 = vld [vmem:[%s4822_s0 + $0x38] sm:$0xf]  ;;  %v3413_v38 = vld [vmem:[%s4822_s0 + $0x3c] sm:$0xf0] }
  0x53   :  { %1897 = vmatpush.bf16.msra.mxu2 %v3454_v36  ;;  %1702 = vmatpush.bf16.msra.mxu1 %v3438_v43  ;;  %v1187_v60 = vsel %vm3723_vm2, %v1182_v47, %v1186_v48  ;;  %v1349_v6 = vunpack.c.l.b16 %v1173_v58  ;;  %v1231_v39 = vshrl.u32 %v3060_v31, 16  ;;  %v2993_v21 = vor.u32 %v3413_v38, %v2992_v59  ;;  %v608_v48 = vld [vmem:[%s4822_s0 + $0x50] sm:$0xe]  ;;  %v609_v52 = vld [vmem:[%s4822_s0 + $0x58] sm:$0xe] }
  0x54   :  { %v1350_v8 = vunpack.c.l.b16 %v1187_v60  ;;  %v1205_v9 = vrot.slane %v1203_v55, 4  ;;  %v1208_v10 = vrot.slane %v1206_v57, 5  ;;  %v1236_v49 = vrot.slane %v1234_v40, 5  ;;  %v3589_v55 = vld [vmem:[%s4822_s0 + $0x54] sm:$0x1] }
  0x55   :  { %2315 = vmatpush.bf16.msra.mxu3 %v3462_v42  ;;  %2589 = vmatpush.bf16.msra.mxu0 %v3470_v44  ;;  %v2865_v42 = vor.u32 %v3381_v41, %v2864_v4  ;;  %v1233_v56 = vrot.slane %v1231_v39, 4  ;;  %v2922_v54 = vrot.slane %v608_v48, 9  ;;  %v685_v57 = vrot.slane %v3589_v55, 5  ;;  %v3590_v60 = vld [vmem:[%s4822_s0 + $0x5c] sm:$0x1] }
  0x56   :  { %564 = vmatmul.bf16.gmra.mxu1 %v2857_v12  ;;  %825 = vmatmul.bf16.gmra.mxu2 %v749_v0  ;;  %v4051_v12 = vld [vmem:[%s4822_s0 + $0x3c] sm:$0x1]  ;;  %v4056_v0 = vld [vmem:[%s4822_s0 + $0x44] sm:$0x1]  ;;  %v1363_v15 = vpack.c.b16 %v1350_v8, %v1349_v6  ;;  %v1209_v18 = vor.u32 %v1208_v10, %v1205_v9  ;;  %v2923_v58 = vrot.slane %v609_v52, 9 }
  0x57   :  { %v1198_v17 = vshll.u32 %v4051_v12, 16  ;;  %v1212_v20 = vshll.u32 %v4056_v0, 16  ;;  %1898 = vmatpush.bf16.msra.mxu2 %v3453_v22  ;;  %1703 = vmatpush.bf16.msra.mxu1 %v3437_v27  ;;  %v1237_v6 = vor.u32 %v1236_v49, %v1233_v56  ;;  %v3062_v8 = vld [vmem:[%s4822_s0 + $0x68] sm:$0xf]  ;;  %v3064_v9 = vld [vmem:[%s4822_s0 + $0x70] sm:$0xf]  ;;  %v686_v10 = vsel %vm3909_vm5, %v2922_v54, %v685_v57 }
  0x58   :  { %1020 = vmatmul.bf16.gmra.mxu3 %v2985_v13  ;;  %v1195_v13 = vor.u32 %v1194_v3, %v1191_v2  ;;  %v1210_v24 = vrot.slane %v1209_v18, 4  ;;  %v1226_v3 = vshll.u32 %v4092_v1, 16  ;;  %v3468_v18 = vld [vmem:[#allocation2 + $0x210] sm:$0xff]  ;;  %v3382_v4 = vld [vmem:[%s4822_s0 + $0x54] sm:$0xf0]  ;;  %v693_v49 = vrot.slane %v3813_v61, 5 }
  0x59   :  { %v1200_v14 = vrot.slane %v1198_v17, 5  ;;  %v1214_v25 = vrot.slane %v1212_v20, 5  ;;  %2316 = vmatpush.bf16.msra.mxu3 %v3461_v26  ;;  %2590 = vmatpush.bf16.msra.mxu0 %v3469_v29  ;;  %v3436_v17 = vld [vmem:[#allocation2 + $0x150] sm:$0xff]  ;;  %v740_v26 = vunpack.c.l.b16 %v686_v10  ;;  %v1259_v29 = vshrl.u32 %v3064_v9, 16  ;;  %v2996_v41 = vld [vmem:[%s4822_s0 + $0x58] sm:$0xf] }
  0x5a   :  { %1438 = vmatmul.bf16.gmra.mxu0 %v1362_v35  ;;  %v1196_v23 = vrot.slane %v1195_v13, 4  ;;  %v1228_v22 = vrot.slane %v1226_v3, 5  ;;  %v2868_v31 = vld [vmem:[%s4822_s0 + $0x50] sm:$0xf]  ;;  %v610_v40 = vld [vmem:[%s4822_s0 + $0x60] sm:$0xe] }
  0x5b   :  { %v1215_v35 = vsel %vm3723_vm2, %v1210_v24, %v1214_v25  ;;  %v1245_v24 = vshrl.u32 %v3062_v8, 16  ;;  %v1248_v25 = vshll.u32 %v3062_v8, 16  ;;  %1704 = vmatpush.bf16.msra.mxu1 %v3436_v17  ;;  %v2869_v38 = vor.u32 %v3382_v4, %v2868_v31  ;;  %v3063_v48 = vld [vmem:[%s4822_s0 + $0x6c] sm:$0x1]  ;;  %v3065_v52 = vld [vmem:[%s4822_s0 + $0x74] sm:$0x1] }
  0x5c   :  { %v1201_v34 = vsel %vm3723_vm2, %v1196_v23, %v1200_v14  ;;  %v1352_v44 = vunpack.c.l.b16 %v1215_v35  ;;  %v1238_v23 = vrot.slane %v1237_v6, 4  ;;  %v2924_v56 = vrot.slane %v610_v40, 9  ;;  %v3066_v8 = vld [vmem:[%s4822_s0 + $0x78] sm:$0xf]  ;;  %v3435_v10 = vld [vmem:[#allocation2 + $0x148] sm:$0xff] }
  0x5d   :  { %v1351_v43 = vunpack.c.l.b16 %v1201_v34  ;;  %2591 = vmatpush.bf16.msra.mxu0 %v3468_v18  ;;  %v3414_v34 = vld [vmem:[%s4822_s0 + $0x5c] sm:$0xf0]  ;;  %v1250_v59 = vrot.slane %v1248_v25, 5  ;;  %v697_v54 = vrot.slane %v3822_v11, 5  ;;  %v1254_v57 = vshll.u32 %v3063_v48, 16 }
  0x5e   :  { %v3383_v25 = vld [vmem:[%s4822_s0 + $0x64] sm:$0xf0] }
  0x5f   :  { %v1364_v53 = vpack.c.b16 %v1352_v44, %v1351_v43  ;;  %v1261_v43 = vrot.slane %v1259_v29, 4  ;;  %v1256_v6 = vrot.slane %v1254_v57, 5  ;;  %1705 = vmatpush.bf16.msra.mxu1 %v3435_v10  ;;  %v3000_v29 = vld [vmem:[%s4822_s0 + $0x68] sm:$0xf]  ;;  %v3450_v57 = vld [vmem:[#allocation2 + $0x180] sm:$0xff]  ;;  %v1540_v10 = vrot.slane %v3892_v51, 5 }
  0x66   :  { %569 = vmatmul.bf16.gmra.mxu1 %v2861_v62  ;;  %830 = vmatmul.bf16.gmra.mxu2 %v3972_v45  ;;  %v3058_v45 = vld [vmem:[%s4822_s0 + $0x58] sm:$0xf]  ;;  %v689_v62 = vrot.slane %v3590_v60, 5  ;;  %v1268_v60 = vshll.u32 %v3065_v52, 16  ;;  %v3592_v52 = vld [vmem:[%s4822_s0 + $0x7c] sm:$0x1] }
  0x67   :  { %v1217_v36 = vshrl.u32 %v3058_v45, 16  ;;  %v1220_v37 = vshll.u32 %v3058_v45, 16  ;;  %v1262_v45 = vshll.u32 %v3064_v9, 16  ;;  %v3459_v9 = vld [vmem:[#allocation2 + $0x1c8] sm:$0xff] }
  0x68   :  { %1025 = vmatmul.bf16.gmra.mxu3 %v2989_v63  ;;  %v3452_v63 = vld [vmem:[#allocation2 + $0x190] sm:$0xff]  ;;  %v690_v13 = vsel %vm3909_vm5, %v2923_v58, %v689_v62  ;;  %v1270_v11 = vrot.slane %v1268_v60, 5 }
  0x69   :  { %v1219_v46 = vrot.slane %v1217_v36, 4  ;;  %v1222_v47 = vrot.slane %v1220_v37, 5  ;;  %1899 = vmatpush.bf16.msra.mxu2 %v3452_v63  ;;  %v741_v27 = vunpack.c.l.b16 %v690_v13  ;;  %v1247_v37 = vrot.slane %v1245_v24, 4  ;;  %v3451_v63 = vld [vmem:[#allocation2 + $0x188] sm:$0xff]  ;;  %v3068_v13 = vld [vmem:[%s4822_s0 + $0x80] sm:$0xf] }
  0x6a   :  { %1443 = vmatmul.bf16.gmra.mxu0 %v1363_v15  ;;  %v3460_v15 = vld [vmem:[#allocation2 + $0x1d0] sm:$0xff]  ;;  %v1264_v44 = vrot.slane %v1262_v45, 5  ;;  %v2872_v24 = vld [vmem:[%s4822_s0 + $0x60] sm:$0xf] }
  0x6b   :  { %v1223_v2 = vor.u32 %v1222_v47, %v1219_v46  ;;  %2317 = vmatpush.bf16.msra.mxu3 %v3460_v15  ;;  %v752_v39 = vpack.c.b16 %v741_v27, %v740_v26  ;;  %v1251_v55 = vor.u32 %v1250_v59, %v1247_v37  ;;  %v3467_v15 = vld [vmem:[#allocation2 + $0x208] sm:$0xff]  ;;  %v1287_v26 = vshrl.u32 %v3068_v13, 16  ;;  %v3415_v45 = vld [vmem:[%s4822_s0 + $0x6c] sm:$0xf0] }
  0x6c   :  { %v1265_v58 = vor.u32 %v1264_v44, %v1261_v43  ;;  %2592 = vmatpush.bf16.msra.mxu0 %v3467_v15  ;;  %v1290_v27 = vshll.u32 %v3068_v13, 16  ;;  %v3001_v37 = vor.u32 %v3415_v45, %v3000_v29  ;;  %v612_v59 = vld [vmem:[%s4822_s0 + $0x70] sm:$0xe]  ;;  %v3069_v43 = vld [vmem:[%s4822_s0 + $0x84] sm:$0x1] }
  0x6d   :  { %v1224_v20 = vrot.slane %v1223_v2, 4  ;;  %v694_v2 = vsel %vm3909_vm5, %v2924_v56, %v693_v49  ;;  %1900 = vmatpush.bf16.msra.mxu2 %v3451_v63  ;;  %v1252_v61 = vrot.slane %v1251_v55, 4  ;;  %v705_v56 = vrot.slane %v3592_v52, 5  ;;  %v2876_v13 = vld [vmem:[%s4822_s0 + $0x70] sm:$0xf] }
  0x6e   :  { %v742_v17 = vunpack.c.l.b16 %v694_v2  ;;  %v1292_v40 = vrot.slane %v1290_v27, 5  ;;  %v1296_v55 = vshll.u32 %v3069_v43, 16  ;;  %v3384_v15 = vld [vmem:[%s4822_s0 + $0x74] sm:$0xf0]  ;;  %v3106_v45 = vld [vmem:[%s4822_s0 + $0x8] sm:$0xe] }
  0x6f   :  { %v1229_v35 = vsel %vm3723_vm2, %v1224_v20, %v1228_v22  ;;  %2318 = vmatpush.bf16.msra.mxu3 %v3459_v9  ;;  %v1257_v20 = vsel %vm3723_vm2, %v1252_v61, %v1256_v6  ;;  %v3458_v61 = vld [vmem:[#allocation2 + $0x1c0] sm:$0xff]  ;;  %v3072_v9 = vld [vmem:[%s4822_s0 + $0x90] sm:$0xf]  ;;  %v2877_v27 = vor.u32 %v3384_v15, %v2876_v13 }
  0x70   :  { %v1353_v46 = vunpack.c.l.b16 %v1229_v35  ;;  %v1355_v31 = vunpack.c.l.b16 %v1257_v20  ;;  %v3434_v6 = vld [vmem:[#allocation2 + $0x140] sm:$0xff] }
  0x71   :  { %1901 = vmatpush.bf16.msra.mxu2 %v3450_v57  ;;  %1706 = vmatpush.bf16.msra.mxu1 %v3434_v6 }
  0x73   :  { %2319 = vmatpush.bf16.msra.mxu3 %v3458_v61 }
  0x76   :  { %574 = vmatmul.bf16.gmra.mxu1 %v2865_v42  ;;  %835 = vmatmul.bf16.gmra.mxu2 %v4022_v5  ;;  %v1240_v5 = vshll.u32 %v4097_v50, 16  ;;  %v611_v42 = vld [vmem:[%s4822_s0 + $0x68] sm:$0xe] }
  0x78   :  { %1030 = vmatmul.bf16.gmra.mxu3 %v2993_v21  ;;  %v1242_v14 = vrot.slane %v1240_v5, 5  ;;  %v2997_v21 = vor.u32 %v3414_v34, %v2996_v41  ;;  %v1266_v5 = vrot.slane %v1265_v58, 4  ;;  %v2873_v41 = vor.u32 %v3383_v25, %v2872_v24 }
  0x79   :  { %v1315_v24 = vshrl.u32 %v3072_v9, 16  ;;  %v1318_v25 = vshll.u32 %v3072_v9, 16 }
  0x7a   :  { %1448 = vmatmul.bf16.gmra.mxu0 %v1364_v53  ;;  %v1243_v36 = vsel %vm3723_vm2, %v1238_v23, %v1242_v14  ;;  %v2925_v53 = vrot.slane %v611_v42, 9  ;;  %v1271_v22 = vsel %vm3723_vm2, %v1266_v5, %v1270_v11  ;;  %v1273_v23 = vshrl.u32 %v3066_v8, 16  ;;  %v3067_v42 = vld [vmem:[%s4822_s0 + $0x7c] sm:$0x1]  ;;  %v3070_v5 = vld [vmem:[%s4822_s0 + $0x88] sm:$0xf] }
  0x7b   :  { %v1354_v47 = vunpack.c.l.b16 %v1243_v36  ;;  %v1276_v14 = vshll.u32 %v3066_v8, 16  ;;  %v1356_v4 = vunpack.c.l.b16 %v1271_v22  ;;  %v1301_v22 = vshrl.u32 %v3070_v5, 16 }
  0x7c   :  { %v698_v3 = vsel %vm3909_vm5, %v2925_v53, %v697_v54  ;;  %v1275_v35 = vrot.slane %v1273_v23, 4  ;;  %v1282_v53 = vshll.u32 %v3067_v42, 16  ;;  %v1304_v51 = vshll.u32 %v3070_v5, 16 }
  0x7d   :  { %v1365_v62 = vpack.c.b16 %v1354_v47, %v1353_v46  ;;  %v743_v18 = vunpack.c.l.b16 %v698_v3  ;;  %v1278_v36 = vrot.slane %v1276_v14, 5  ;;  %v1366_v44 = vpack.c.b16 %v1356_v4, %v1355_v31  ;;  %v3591_v46 = vld [vmem:[%s4822_s0 + $0x74] sm:$0x1]  ;;  %v3416_v14 = vld [vmem:[%s4822_s0 + $0x7c] sm:$0xf0] }
  0x7e   :  { %v701_v47 = vrot.slane %v3591_v46, 5  ;;  %v1284_v63 = vrot.slane %v1282_v53, 5  ;;  %v1298_v3 = vrot.slane %v1296_v55, 5  ;;  %v1544_v23 = vrot.slane %v3901_v7, 5  ;;  %v3107_v31 = vld [vmem:[%s4822_s0 + $0x10] sm:$0xe] }
  0x7f   :  { %v753_v34 = vpack.c.b16 %v743_v18, %v742_v17  ;;  %v1279_v49 = vor.u32 %v1278_v36, %v1275_v35  ;;  %v3004_v17 = vld [vmem:[%s4822_s0 + $0x78] sm:$0xf]  ;;  %v3122_v7 = vrot.slane %v3106_v45, 9  ;;  %v1317_v42 = vrot.slane %v1315_v24, 4  ;;  %v3071_v46 = vld [vmem:[%s4822_s0 + $0x8c] sm:$0x1] }
  0x80   :  { %v3005_v36 = vor.u32 %v3416_v14, %v3004_v17  ;;  %v1320_v43 = vrot.slane %v1318_v25, 5  ;;  %v3250_v53 = vld [vmem:[%s4822_s0 + $0x10] sm:$0xf] }
  0x82   :  { %v1321_v61 = vor.u32 %v1320_v43, %v1317_v42 }
  0x86   :  { %579 = vmatmul.bf16.gmra.mxu1 %v2869_v38  ;;  %840 = vmatmul.bf16.gmra.mxu2 %v752_v39  ;;  %v613_v38 = vld [vmem:[%s4822_s0 + $0x78] sm:$0xe]  ;;  %v1289_v39 = vrot.slane %v1287_v26, 4  ;;  %v3466_v26 = vld [vmem:[#allocation2 + $0x200] sm:$0xff] }
  0x87   :  { %v2927_v48 = vrot.slane %v613_v38, 9  ;;  %2593 = vmatpush.bf16.msra.mxu0 %v3466_v26  ;;  %v1306_v38 = vrot.slane %v1304_v51, 5  ;;  %v1322_v51 = vrot.slane %v1321_v61, 4  ;;  %v3256_v61 = vld [vmem:[%s4822_s0 + $0x28] sm:$0xf] }
  0x88   :  { %1035 = vmatmul.bf16.gmra.mxu3 %v2997_v21  ;;  %v2926_v21 = vrot.slane %v612_v59, 9  ;;  %v1293_v54 = vor.u32 %v1292_v40, %v1289_v39  ;;  %v1303_v59 = vrot.slane %v1301_v22, 4  ;;  %v615_v40 = vld [vmem:[%s4822_s0 + $0x88] sm:$0xe] }
  0x89   :  { %v706_v60 = vsel %vm3909_vm5, %v2927_v48, %v705_v56  ;;  %v2929_v57 = vrot.slane %v615_v40, 9 }
  0x8a   :  { %1453 = vmatmul.bf16.gmra.mxu0 %v1365_v62  ;;  %v702_v58 = vsel %vm3909_vm5, %v2926_v21, %v701_v47  ;;  %v1280_v62 = vrot.slane %v1279_v49, 4  ;;  %v1294_v2 = vrot.slane %v1293_v54, 4  ;;  %v745_v8 = vunpack.c.l.b16 %v706_v60  ;;  %v3073_v47 = vld [vmem:[%s4822_s0 + $0x94] sm:$0x1]  ;;  %v3593_v54 = vld [vmem:[%s4822_s0 + $0x84] sm:$0x1] }
  0x8b   :  { %v744_v11 = vunpack.c.l.b16 %v702_v58  ;;  %v709_v55 = vrot.slane %v3593_v54, 5  ;;  %v3594_v58 = vld [vmem:[%s4822_s0 + $0x8c] sm:$0x1]  ;;  %v1324_v6 = vshll.u32 %v3073_v47, 16 }
  0x8c   :  { %v1285_v18 = vsel %vm3723_vm2, %v1280_v62, %v1284_v63  ;;  %v1299_v20 = vsel %vm3723_vm2, %v1294_v2, %v1298_v3  ;;  %v713_v60 = vrot.slane %v3594_v58, 5  ;;  %v3252_v63 = vld [vmem:[%s4822_s0 + $0x18] sm:$0xf]  ;;  %v1307_v2 = vor.u32 %v1306_v38, %v1303_v59  ;;  %v3314_v58 = vld [vmem:[%s4822_s0 + $0x10] sm:$0xe] }
  0x8d   :  { %v754_v29 = vpack.c.b16 %v745_v8, %v744_v11  ;;  %v1357_v4 = vunpack.c.l.b16 %v1285_v18  ;;  %v1310_v3 = vshll.u32 %v3071_v46, 16  ;;  %v1992_v11 = vshrl.u32 %v3250_v53, 16 }
  0x8e   :  { %v1995_v8 = vshll.u32 %v3250_v53, 16  ;;  %v2009_v13 = vshll.u32 %v3252_v63, 16  ;;  %v714_v18 = vsel %vm3909_vm5, %v2929_v57, %v713_v60 }
  0x8f   :  { %v1312_v22 = vrot.slane %v1310_v3, 5  ;;  %v1994_v14 = vrot.slane %v1992_v11, 4  ;;  %v3254_v3 = vld [vmem:[%s4822_s0 + $0x20] sm:$0xf] }
  0x90   :  { %v1997_v24 = vrot.slane %v1995_v8, 5  ;;  %v3330_v8 = vrot.slane %v3314_v58, 9 }
  0x92   :  { %v1998_v40 = vor.u32 %v1997_v24, %v1994_v14  ;;  %v2034_v14 = vshrl.u32 %v3256_v61, 16  ;;  %v2037_v24 = vshll.u32 %v3256_v61, 16 }
  0x94   :  { %v1999_v53 = vrot.slane %v1998_v40, 4  ;;  %v4344_v40 = vld [vmem:[%s4822_s0 + $0x2c] sm:$0x1] }
  0x95   :  { %v2043_v58 = vshll.u32 %v4344_v40, 16 }
  0x96   :  { %584 = vmatmul.bf16.gmra.mxu1 %v2873_v41  ;;  %845 = vmatmul.bf16.gmra.mxu2 %v753_v34  ;;  %v1358_v41 = vunpack.c.l.b16 %v1299_v20  ;;  %v3123_v34 = vrot.slane %v3107_v31, 9  ;;  %v1308_v20 = vrot.slane %v1307_v2, 4  ;;  %v2011_v31 = vrot.slane %v2009_v13, 5 }
  0x98   :  { %1040 = vmatmul.bf16.gmra.mxu3 %v3001_v37  ;;  %v614_v37 = vld [vmem:[%s4822_s0 + $0x80] sm:$0xe]  ;;  %v1545_v21 = vsel %vm3909_vm5, %v3123_v34, %v1544_v23  ;;  %v1367_v56 = vpack.c.b16 %v1358_v41, %v1357_v4  ;;  %v1326_v23 = vrot.slane %v1324_v6, 5  ;;  %v3385_v41 = vld [vmem:[%s4822_s0 + $0x84] sm:$0xf0] }
  0x99   :  { %v1620_v52 = vunpack.c.l.b16 %v1545_v21  ;;  %v2928_v49 = vrot.slane %v614_v37, 9  ;;  %v2880_v4 = vld [vmem:[%s4822_s0 + $0x80] sm:$0xf]  ;;  %v3008_v34 = vld [vmem:[%s4822_s0 + $0x88] sm:$0xf]  ;;  %v1313_v37 = vsel %vm3723_vm2, %v1308_v20, %v1312_v22 }
  0x9a   :  { %1458 = vmatmul.bf16.gmra.mxu0 %v1366_v44  ;;  %v1541_v44 = vsel %vm3909_vm5, %v3122_v7, %v1540_v10  ;;  %v2006_v10 = vshrl.u32 %v3252_v63, 16  ;;  %v3253_v7 = vld [vmem:[%s4822_s0 + $0x1c] sm:$0x1]  ;;  %v1327_v59 = vsel %vm3723_vm2, %v1322_v51, %v1326_v23  ;;  %v3315_v63 = vld [vmem:[%s4822_s0 + $0x18] sm:$0xe]  ;;  %v2020_v51 = vshrl.u32 %v3254_v3, 16 }
  0x9b   :  { %v1619_v48 = vunpack.c.l.b16 %v1541_v44  ;;  %v710_v17 = vsel %vm3909_vm5, %v2928_v49, %v709_v55  ;;  %v2881_v44 = vor.u32 %v3385_v41, %v2880_v4  ;;  %v2015_v47 = vshll.u32 %v3253_v7, 16  ;;  %v3442_v4 = vld [vmem:[%s4822_s0 + $0x14] sm:$0xf0] }
  0x9c   :  { %v746_v26 = vunpack.c.l.b16 %v710_v17  ;;  %v2008_v45 = vrot.slane %v2006_v10, 4  ;;  %v1360_v49 = vunpack.c.l.b16 %v1327_v59  ;;  %v2431_v20 = vrot.slane %v3253_v7, 5  ;;  %v4339_v59 = vld [vmem:[%s4822_s0 + $0x24] sm:$0x1] }
  0x9d   :  { %v4255_v62 = vpack.c.b16 %v1620_v52, %v1619_v48  ;;  %v2017_v57 = vrot.slane %v2015_v47, 5  ;;  %v2023_v23 = vshll.u32 %v3254_v3, 16  ;;  %v2022_v41 = vrot.slane %v2020_v51, 4 }
  0x9e   :  { %v2012_v46 = vor.u32 %v2011_v31, %v2008_v45  ;;  %v1548_v3 = vrot.slane %v3955_v19, 5  ;;  %v2045_v19 = vrot.slane %v2043_v58, 5 }
  0x9f   :  { %v2025_v7 = vrot.slane %v2023_v23, 5 }
  0xa0   :  { %v2013_v55 = vrot.slane %v2012_v46, 4 }
  0xa2   :  { %v2018_v13 = vsel %vm3723_vm2, %v2013_v55, %v2017_v57  ;;  %v2029_v55 = vshll.u32 %v4339_v59, 16 }
  0xa3   :  { %v4226_v35 = vpop.f32.mrf.mxu1  ;;  %v2233_v45 = vunpack.c.l.b16 %v2018_v13  ;;  %v3258_v13 = vld [vmem:[%s4822_s0 + $0x30] sm:$0xf] }
  0xa5   :  { %v4231_v39 = vpop.f32.mrf.mxu0 }
  0xa6   :  { %589 = vmatmul.bf16.gmra.mxu1 %v2877_v27  ;;  %850 = vmatmul.bf16.gmra.mxu2 %v754_v29  ;;  %v747_v27 = vunpack.c.l.b16 %v714_v18  ;;  %v3251_v29 = vld [vmem:[%s4822_s0 + $0x14] sm:$0x1]  ;;  %v3331_v18 = vrot.slane %v3315_v63, 9 }
  0xa7   :  { %v2001_v42 = vshll.u32 %v3251_v29, 16  ;;  %v2427_v17 = vrot.slane %v3251_v29, 5 }
  0xa8   :  { %1045 = vmatmul.bf16.gmra.mxu3 %v3005_v36  ;;  %v3417_v36 = vld [vmem:[%s4822_s0 + $0x8c] sm:$0xf0]  ;;  %v755_v21 = vpack.c.b16 %v747_v27, %v746_v26  ;;  %v2432_v29 = vsel %vm3909_vm5, %v3331_v18, %v2431_v20  ;;  %v2031_v18 = vrot.slane %v2029_v55, 5 }
  0xa9   :  { %v4260_v5 = vpop.f32.mrf.mxu2  ;;  %v3009_v52 = vor.u32 %v3417_v36, %v3008_v34  ;;  %v2003_v54 = vrot.slane %v2001_v42, 5  ;;  %v3188_v26 = vld [vmem:[%s4822_s0 + $0x10] sm:$0xf]  ;;  %v2428_v31 = vsel %vm3909_vm5, %v3330_v8, %v2427_v17  ;;  %v2036_v34 = vrot.slane %v2034_v14, 4  ;;  %v3260_v17 = vld [vmem:[%s4822_s0 + $0x38] sm:$0xf] }
  0xaa   :  { %1463 = vmatmul.bf16.gmra.mxu0 %v1367_v56  ;;  %v1359_v56 = vunpack.c.l.b16 %v1313_v37  ;;  %v2039_v36 = vrot.slane %v2037_v24, 5  ;;  %v2506_v47 = vunpack.c.l.b16 %v2428_v31  ;;  %v1552_v8 = vrot.slane %v3963_v32, 5  ;;  %v3317_v32 = vld [vmem:[%s4822_s0 + $0x28] sm:$0xe] }
  0xab   :  { %v4262_v9 = vpop.f32.mrf.mxu3  ;;  %v4264_v15 = vpop.f32.mrf.mxu1  ;;  %v2004_v11 = vsel %vm3723_vm2, %v1999_v53, %v2003_v54  ;;  %v3109_v53 = vld [vmem:[%s4822_s0 + $0x20] sm:$0xe]  ;;  %v2026_v54 = vor.u32 %v2025_v7, %v2022_v41  ;;  %v2048_v14 = vshrl.u32 %v3258_v13, 16  ;;  %v2051_v24 = vshll.u32 %v3258_v13, 16 }
  0xac   :  { %v1368_v60 = vpack.c.b16 %v1360_v49, %v1359_v56  ;;  %v2232_v27 = vunpack.c.l.b16 %v2004_v11  ;;  %v3108_v56 = vld [vmem:[%s4822_s0 + $0x18] sm:$0xe]  ;;  %v2040_v57 = vor.u32 %v2039_v36, %v2036_v34  ;;  %v3125_v11 = vrot.slane %v3109_v53, 9 }
  0xad   :  { %v4270_v25 = vpop.f32.mrf.mxu0  ;;  %v3124_v63 = vrot.slane %v3108_v56, 9  ;;  %v2439_v56 = vrot.slane %v4344_v40, 5  ;;  %v2053_v53 = vrot.slane %v2051_v24, 5  ;;  %v3192_v40 = vld [vmem:[%s4822_s0 + $0x20] sm:$0xf] }
  0xae   :  { %v2248_v46 = vpack.c.b16 %v2233_v45, %v2232_v27  ;;  %v2041_v20 = vrot.slane %v2040_v57, 4  ;;  %v2065_v27 = vshll.u32 %v3260_v17, 16 }
  0xb0   :  { %v2046_v34 = vsel %vm3723_vm2, %v2041_v20, %v2045_v19  ;;  %v2067_v55 = vrot.slane %v2065_v27, 5 }
  0xb1   :  { %v4294_v38 = vpop.f32.mrf.mxu2 }
  0xb3   :  { %v4296_v43 = vpop.f32.mrf.mxu3  ;;  %v4298_v48 = vpop.f32.mrf.mxu1 }
  0xb6   :  { %594 = vmatmul.bf16.gmra.mxu1 %v2881_v44  ;;  %855 = vmatmul.bf16.gmra.mxu2 %v755_v21  ;;  %v3189_v21 = vor.u32 %v3442_v4, %v3188_v26  ;;  %v2062_v26 = vshrl.u32 %v3260_v17, 16  ;;  %v1553_v4 = vsel %vm3909_vm5, %v3125_v11, %v1552_v8  ;;  %v3110_v17 = vld [vmem:[%s4822_s0 + $0x28] sm:$0xe] }
  0xb7   :  { %v4306_v2 = vpop.f32.mrf.mxu0  ;;  %v1622_v58 = vunpack.c.l.b16 %v1553_v4  ;;  %v1556_v4 = vrot.slane %v4015_v33, 5  ;;  %v3319_v33 = vld [vmem:[%s4822_s0 + $0x38] sm:$0xe] }
  0xb8   :  { %1050 = vmatmul.bf16.gmra.mxu3 %v3009_v52  ;;  %v2507_v52 = vunpack.c.l.b16 %v2432_v29  ;;  %v1549_v29 = vsel %vm3909_vm5, %v3124_v63, %v1548_v3  ;;  %v3443_v63 = vld [vmem:[%s4822_s0 + $0x24] sm:$0xf0] }
  0xb9   :  { %v4314_v6 = vpop.f32.mrf.mxu2  ;;  %v1621_v57 = vunpack.c.l.b16 %v1549_v29  ;;  %v3193_v24 = vor.u32 %v3443_v63, %v3192_v40  ;;  %v3126_v29 = vrot.slane %v3110_v17, 9  ;;  %v3335_v17 = vrot.slane %v3319_v33, 9 }
  0xba   :  { %1468 = vmatmul.bf16.gmra.mxu0 %v1368_v60  ;;  %v2522_v61 = vpack.c.b16 %v2507_v52, %v2506_v47  ;;  %v3333_v52 = vrot.slane %v3317_v32, 9 }
  0xbb   :  { %v4318_v10 = vpop.f32.mrf.mxu3  ;;  %v4322_v22 = vpop.f32.mrf.mxu1 }
  0xbc   :  { %v2440_v13 = vsel %vm3909_vm5, %v3333_v52, %v2439_v56  ;;  %v3318_v56 = vld [vmem:[%s4822_s0 + $0x30] sm:$0xe] }
  0xbf   :  { %v4334_v37 = vpop.f32.mrf.mxu0 }
  0xc1   :  { %v4346_v42 = vpop.f32.mrf.mxu2 }
  0xc3   :  { %v4348_v44 = vpop.f32.mrf.mxu3  ;;  %v560_v49 = vpop.f32.mrf.mxu1 }
  0xc4   :  { %v561_v60 = vadd.f32 %v560_v49, %v4231_v39  ;;  %v2027_v39 = vrot.slane %v2026_v54, 4  ;;  %v2050_v49 = vrot.slane %v2048_v14, 4  ;;  %v2064_v54 = vrot.slane %v2062_v26, 4 }
  0xc5   :  { %v1636_v14 = vpack.c.b16 %v1622_v58, %v1621_v57 }
  0xc6   :  { %1707 = vmatmul.bf16.vlgmr.msra.gmra.mxu1 %v4255_v62  ;;  %1902 = vmatmul.bf16.vlgmr.msra.gmra.mxu2 %v3189_v21  ;;  %v3316_v62 = vld [vmem:[%s4822_s0 + $0x20] sm:$0xe]  ;;  %v2032_v7 = vsel %vm3723_vm2, %v2027_v39, %v2031_v18  ;;  %v2435_v21 = vrot.slane %v4339_v59, 5  ;;  %v4393_v59 = vld [vmem:[%s4822_s0 + $0x3c] sm:$0x1]  ;;  %v2054_v20 = vor.u32 %v2053_v53, %v2050_v49 }
  0xc7   :  { %v1434_v51 = vpop.f32.mrf.mxu0  ;;  %v3332_v36 = vrot.slane %v3316_v62, 9  ;;  %v2234_v3 = vunpack.c.l.b16 %v2032_v7  ;;  %v3111_v18 = vld [vmem:[%s4822_s0 + $0x30] sm:$0xe]  ;;  %v2071_v62 = vshll.u32 %v4393_v59, 16  ;;  %v3262_v53 = vld [vmem:[%s4822_s0 + $0x40] sm:$0xf] }
  0xc8   :  { %2320 = vmatmul.bf16.vlgmr.msra.gmra.mxu3 %v2248_v46 }
  0xc9   :  { %v821_v23 = vpop.f32.mrf.mxu2  ;;  %v2436_v11 = vsel %vm3909_vm5, %v3332_v36, %v2435_v21  ;;  %v1560_v36 = vrot.slane %v4020_v28, 5  ;;  %v2055_v21 = vrot.slane %v2054_v20, 4  ;;  %v1557_v28 = vsel %vm3909_vm5, %v3126_v29, %v1556_v4 }
  0xca   :  { %v861_v45 = vadd.f32 %v821_v23, %v561_v60  ;;  %2594 = vmatmul.bf16.vlgmr.msra.gmra.mxu0 %v2522_v61  ;;  %v4388_v60 = vld [vmem:[%s4822_s0 + $0x34] sm:$0x1]  ;;  %v2235_v61 = vunpack.c.l.b16 %v2046_v34  ;;  %v2508_v26 = vunpack.c.l.b16 %v2436_v11  ;;  %v3127_v34 = vrot.slane %v3111_v18, 9 }
  0xcb   :  { %v1016_v31 = vpop.f32.mrf.mxu3  ;;  %v562_v41 = vpop.f32.mrf.mxu1  ;;  %v2057_v19 = vshll.u32 %v4388_v60, 16  ;;  %v2076_v18 = vshrl.u32 %v3262_v53, 16  ;;  %v2079_v20 = vshll.u32 %v3262_v53, 16 }
  0xcc   :  { %v1056_v46 = vadd.f32 %v1016_v31, %v861_v45  ;;  %v563_v47 = vadd.f32 %v562_v41, %v4270_v25  ;;  %v2249_v45 = vpack.c.b16 %v2235_v61, %v2234_v3  ;;  %v2509_v31 = vunpack.c.l.b16 %v2440_v13 }
  0xcd   :  { %v1561_v58 = vsel %vm3909_vm5, %v3127_v34, %v1560_v36  ;;  %v3334_v3 = vrot.slane %v3318_v56, 9  ;;  %v2443_v13 = vrot.slane %v4388_v60, 5  ;;  %v3444_v60 = vld [vmem:[%s4822_s0 + $0x34] sm:$0xf0]  ;;  %v2081_v29 = vrot.slane %v2079_v20, 5 }
  0xce   :  { %v4395_v25 = vadd.f32 %v1434_v51, %v1056_v46  ;;  %v2068_v51 = vor.u32 %v2067_v55, %v2064_v54  ;;  %v2059_v46 = vrot.slane %v2057_v19, 5  ;;  %v2523_v49 = vpack.c.b16 %v2509_v31, %v2508_v26  ;;  %v3264_v54 = vld [vmem:[%s4822_s0 + $0x48] sm:$0xf]  ;;  %v3196_v26 = vld [vmem:[%s4822_s0 + $0x30] sm:$0xf] }
  0xcf   :  { %v1436_v8 = vpop.f32.mrf.mxu0  ;;  %v2090_v19 = vshrl.u32 %v3264_v54, 16  ;;  %v4458_v34 = vld [vmem:[%s4822_s0 + $0x44] sm:$0x1]  ;;  %v4463_v36 = vld [vmem:[%s4822_s0 + $0x4c] sm:$0x1] }
  0xd0   :  { %v2069_v52 = vrot.slane %v2068_v51, 4  ;;  %v2060_v40 = vsel %vm3723_vm2, %v2055_v21, %v2059_v46  ;;  %v2093_v51 = vshll.u32 %v3264_v54, 16  ;;  %v3113_v54 = vld [vmem:[%s4822_s0 + $0x40] sm:$0xe] }
  0xd1   :  { %v823_v39 = vpop.f32.mrf.mxu2  ;;  %v2092_v4 = vrot.slane %v2090_v19, 4 }
  0xd2   :  { %v862_v23 = vadd.f32 %v823_v39, %v563_v47  ;;  %v2073_v47 = vrot.slane %v2071_v62, 5  ;;  %v2447_v39 = vrot.slane %v4393_v59, 5 }
  0xd3   :  { %v1018_v32 = vpop.f32.mrf.mxu3  ;;  %v565_v27 = vpop.f32.mrf.mxu1 }
  0xd4   :  { %v1057_v41 = vadd.f32 %v1018_v32, %v862_v23  ;;  %v566_v7 = vadd.f32 %v565_v27, %v4306_v2  ;;  %v2074_v63 = vsel %vm3723_vm2, %v2069_v52, %v2073_v47  ;;  %v1623_v32 = vunpack.c.l.b16 %v1557_v28  ;;  %v3112_v28 = vld [vmem:[%s4822_s0 + $0x38] sm:$0xe] }
  0xd5   :  { %v2237_v59 = vunpack.c.l.b16 %v2074_v63  ;;  %v2444_v27 = vsel %vm3909_vm5, %v3334_v3, %v2443_v13  ;;  %v3197_v52 = vor.u32 %v3444_v60, %v3196_v26  ;;  %v2099_v63 = vshll.u32 %v4463_v36, 16 }
  0xd6   :  { %1712 = vmatmul.bf16.gmra.mxu1 %v1636_v14  ;;  %1907 = vmatmul.bf16.gmra.mxu2 %v3193_v24  ;;  %v4432_v55 = vadd.f32 %v1436_v8, %v1057_v41  ;;  %v1624_v14 = vunpack.c.l.b16 %v1561_v58  ;;  %v2236_v24 = vunpack.c.l.b16 %v2060_v40  ;;  %v2095_v41 = vrot.slane %v2093_v51, 5 }
  0xd7   :  { %v1439_v2 = vpop.f32.mrf.mxu0  ;;  %v2510_v33 = vunpack.c.l.b16 %v2444_v27  ;;  %v2085_v58 = vshll.u32 %v4458_v34, 16  ;;  %v1564_v13 = vrot.slane %v4051_v12, 5 }
  0xd8   :  { %2325 = vmatmul.bf16.gmra.mxu3 %v2249_v45  ;;  %v2448_v45 = vsel %vm3909_vm5, %v3335_v17, %v2447_v39  ;;  %v1637_v46 = vpack.c.b16 %v1624_v14, %v1623_v32  ;;  %v2096_v40 = vor.u32 %v2095_v41, %v2092_v4  ;;  %v3129_v39 = vrot.slane %v3113_v54, 9 }
  0xd9   :  { %v826_v57 = vpop.f32.mrf.mxu2  ;;  %v2087_v19 = vrot.slane %v2085_v58, 5 }
  0xda   :  { %v863_v61 = vadd.f32 %v826_v57, %v566_v7  ;;  %2599 = vmatmul.bf16.gmra.mxu0 %v2523_v49  ;;  %v2250_v49 = vpack.c.b16 %v2237_v59, %v2236_v24  ;;  %v2097_v51 = vrot.slane %v2096_v40, 4  ;;  %v3321_v24 = vld [vmem:[%s4822_s0 + $0x48] sm:$0xe] }
  0xdb   :  { %v1021_v11 = vpop.f32.mrf.mxu3  ;;  %v567_v8 = vpop.f32.mrf.mxu1 }
  0xdc   :  { %v1058_v62 = vadd.f32 %v1021_v11, %v863_v61  ;;  %v568_v23 = vadd.f32 %v567_v8, %v4334_v37  ;;  %v2078_v37 = vrot.slane %v2076_v18, 4  ;;  %v3128_v11 = vrot.slane %v3112_v28, 9  ;;  %v3266_v18 = vld [vmem:[%s4822_s0 + $0x60] sm:$0xf] }
  0xdd   :  { %v1568_v8 = vrot.slane %v4056_v0, 5  ;;  %v2104_v26 = vshrl.u32 %v3266_v18, 16  ;;  %v2107_v60 = vshll.u32 %v3266_v18, 16 }
  0xde   :  { %v4453_v31 = vadd.f32 %v1439_v2, %v1058_v62  ;;  %v2511_v2 = vunpack.c.l.b16 %v2448_v45  ;;  %v2082_v57 = vor.u32 %v2081_v29, %v2078_v37  ;;  %v2101_v62 = vrot.slane %v2099_v63, 5 }
  0xdf   :  { %v1441_v7 = vpop.f32.mrf.mxu0  ;;  %v1565_v14 = vsel %vm3909_vm5, %v3128_v11, %v1564_v13  ;;  %v1569_v45 = vsel %vm3909_vm5, %v3129_v39, %v1568_v8  ;;  %v2106_v28 = vrot.slane %v2104_v26, 4  ;;  %v3114_v8 = vld [vmem:[%s4822_s0 + $0x58] sm:$0xe] }
  0xe0   :  { %v2524_v17 = vpack.c.b16 %v2511_v2, %v2510_v33  ;;  %v2083_v20 = vrot.slane %v2082_v57, 4  ;;  %v1625_v33 = vunpack.c.l.b16 %v1565_v14  ;;  %v3200_v2 = vld [vmem:[%s4822_s0 + $0x40] sm:$0xf]  ;;  %v1626_v54 = vunpack.c.l.b16 %v1569_v45  ;;  %v3445_v57 = vld [vmem:[%s4822_s0 + $0x44] sm:$0xf0] }
  0xe1   :  { %v828_v21 = vpop.f32.mrf.mxu2  ;;  %v3201_v39 = vor.u32 %v3445_v57, %v3200_v2  ;;  %v1572_v45 = vrot.slane %v4092_v1, 5  ;;  %v3323_v1 = vld [vmem:[%s4822_s0 + $0x68] sm:$0xe] }
  0xe2   :  { %v864_v47 = vadd.f32 %v828_v21, %v568_v23  ;;  %v3320_v23 = vld [vmem:[%s4822_s0 + $0x40] sm:$0xe]  ;;  %v2088_v41 = vsel %vm3723_vm2, %v2083_v20, %v2087_v19 }
  0xe3   :  { %v1023_v56 = vpop.f32.mrf.mxu3  ;;  %v570_v53 = vpop.f32.mrf.mxu1  ;;  %v3336_v21 = vrot.slane %v3320_v23, 9  ;;  %v2238_v40 = vunpack.c.l.b16 %v2088_v41 }
  0xe4   :  { %v1059_v3 = vadd.f32 %v1023_v56, %v864_v47  ;;  %v571_v61 = vadd.f32 %v570_v53, %v4226_v35  ;;  %v3268_v35 = vld [vmem:[%s4822_s0 + $0x68] sm:$0xf]  ;;  %v3337_v56 = vrot.slane %v3321_v24, 9  ;;  %v2109_v53 = vrot.slane %v2107_v60, 5 }
  0xe5   :  { %v2118_v37 = vshrl.u32 %v3268_v35, 16  ;;  %v2121_v29 = vshll.u32 %v3268_v35, 16  ;;  %v3115_v35 = vld [vmem:[%s4822_s0 + $0x60] sm:$0xe] }
  0xe6   :  { %1717 = vmatmul.bf16.gmra.mxu1 %v1637_v46  ;;  %1912 = vmatmul.bf16.gmra.mxu2 %v3197_v52  ;;  %v4485_v32 = vadd.f32 %v1441_v7, %v1059_v3  ;;  %v2102_v7 = vsel %vm3723_vm2, %v2097_v51, %v2101_v62  ;;  %v2451_v46 = vrot.slane %v4458_v34, 5  ;;  %v4510_v34 = vld [vmem:[%s4822_s0 + $0x64] sm:$0x1]  ;;  %v4517_v3 = vld [vmem:[%s4822_s0 + $0x6c] sm:$0x1]  ;;  %v2110_v18 = vor.u32 %v2109_v53, %v2106_v28 }
  0xe7   :  { %v1444_v12 = vpop.f32.mrf.mxu0  ;;  %v2123_v58 = vrot.slane %v2121_v29, 5  ;;  %v2239_v63 = vunpack.c.l.b16 %v2102_v7  ;;  %v2113_v20 = vshll.u32 %v4510_v34, 16  ;;  %v1638_v62 = vpack.c.b16 %v1626_v54, %v1625_v33  ;;  %v3272_v28 = vld [vmem:[%s4822_s0 + $0x78] sm:$0xf] }
  0xe8   :  { %2330 = vmatmul.bf16.gmra.mxu3 %v2250_v49  ;;  %v2455_v49 = vrot.slane %v4463_v36, 5  ;;  %v2452_v11 = vsel %vm3909_vm5, %v3336_v21, %v2451_v46  ;;  %v2127_v23 = vshll.u32 %v4517_v3, 16  ;;  %v1576_v29 = vrot.slane %v4097_v50, 5  ;;  %v3270_v50 = vld [vmem:[%s4822_s0 + $0x70] sm:$0xf] }
  0xe9   :  { %v831_v0 = vpop.f32.mrf.mxu2  ;;  %v2251_v14 = vpack.c.b16 %v2239_v63, %v2238_v40  ;;  %v2512_v24 = vunpack.c.l.b16 %v2452_v11  ;;  %v2115_v41 = vrot.slane %v2113_v20, 5  ;;  %v3339_v63 = vrot.slane %v3323_v1, 9 }
  0xea   :  { %v865_v59 = vadd.f32 %v831_v0, %v571_v61  ;;  %2604 = vmatmul.bf16.gmra.mxu0 %v2524_v17  ;;  %v2456_v13 = vsel %vm3909_vm5, %v3337_v56, %v2455_v49  ;;  %v2129_v21 = vrot.slane %v2127_v23, 5  ;;  %v2132_v11 = vshrl.u32 %v3270_v50, 16 }
  0xeb   :  { %v1026_v27 = vpop.f32.mrf.mxu3  ;;  %v572_v4 = vpop.f32.mrf.mxu1  ;;  %v2513_v26 = vunpack.c.l.b16 %v2456_v13  ;;  %v2135_v13 = vshll.u32 %v3270_v50, 16 }
  0xec   :  { %v1060_v52 = vadd.f32 %v1026_v27, %v865_v59  ;;  %v573_v47 = vadd.f32 %v572_v4, %v4264_v15  ;;  %v2120_v15 = vrot.slane %v2118_v37, 4  ;;  %v3130_v27 = vrot.slane %v3114_v8, 9 }
  0xed   :  { %v3131_v37 = vrot.slane %v3115_v35, 9  ;;  %v2111_v4 = vrot.slane %v2110_v18, 4  ;;  %v2525_v46 = vpack.c.b16 %v2513_v26, %v2512_v24  ;;  %v2146_v8 = vshrl.u32 %v3272_v28, 16  ;;  %v4574_v24 = vld [vmem:[%s4822_s0 + $0x74] sm:$0x1] }
  0xee   :  { %v4512_v36 = vadd.f32 %v1444_v12, %v1060_v52  ;;  %v2124_v12 = vor.u32 %v2123_v58, %v2120_v15  ;;  %v3322_v52 = vld [vmem:[%s4822_s0 + $0x60] sm:$0xe]  ;;  %v1573_v49 = vsel %vm3909_vm5, %v3130_v27, %v1572_v45  ;;  %v2459_v58 = vrot.slane %v4510_v34, 5  ;;  %v3446_v34 = vld [vmem:[%s4822_s0 + $0x64] sm:$0xf0] }
  0xef   :  { %v1446_v61 = vpop.f32.mrf.mxu0  ;;  %v1577_v33 = vsel %vm3909_vm5, %v3131_v37, %v1576_v29  ;;  %v2116_v2 = vsel %vm3723_vm2, %v2111_v4, %v2115_v41  ;;  %v3338_v15 = vrot.slane %v3322_v52, 9  ;;  %v2149_v18 = vshll.u32 %v3272_v28, 16  ;;  %v4579_v45 = vld [vmem:[%s4822_s0 + $0x7c] sm:$0x1]  ;;  %v3116_v52 = vld [vmem:[%s4822_s0 + $0x68] sm:$0xe] }
  0xf0   :  { %v2125_v7 = vrot.slane %v2124_v12, 4  ;;  %v1627_v20 = vunpack.c.l.b16 %v1573_v49  ;;  %v2134_v23 = vrot.slane %v2132_v11, 4  ;;  %v2148_v26 = vrot.slane %v2146_v8, 4  ;;  %v3276_v11 = vld [vmem:[%s4822_s0 + $0x88] sm:$0xf] }
  0xf1   :  { %v833_v17 = vpop.f32.mrf.mxu2  ;;  %v2460_v12 = vsel %vm3909_vm5, %v3338_v15, %v2459_v58  ;;  %v2141_v1 = vshll.u32 %v4574_v24, 16  ;;  %v3132_v28 = vrot.slane %v3116_v52, 9  ;;  %v3596_v58 = vld [vmem:[%s4822_s0 + $0x74] sm:$0x1] }
  0xf2   :  { %v866_v19 = vadd.f32 %v833_v17, %v573_v47  ;;  %v2130_v57 = vsel %vm3723_vm2, %v2125_v7, %v2129_v21  ;;  %v2514_v41 = vunpack.c.l.b16 %v2460_v12 }
  0xf3   :  { %v1028_v51 = vpop.f32.mrf.mxu3  ;;  %v575_v0 = vpop.f32.mrf.mxu1  ;;  %v2241_v35 = vunpack.c.l.b16 %v2130_v57  ;;  %v3274_v57 = vld [vmem:[%s4822_s0 + $0x80] sm:$0xf] }
  0xf4   :  { %v1061_v60 = vadd.f32 %v1028_v51, %v866_v19  ;;  %v576_v59 = vadd.f32 %v575_v0, %v4298_v48  ;;  %v1628_v19 = vunpack.c.l.b16 %v1577_v33  ;;  %v3204_v51 = vld [vmem:[%s4822_s0 + $0x60] sm:$0xf]  ;;  %v2137_v0 = vrot.slane %v2135_v13, 5 }
  0xf5   :  { %v3205_v27 = vor.u32 %v3446_v34, %v3204_v51  ;;  %v2155_v33 = vshll.u32 %v4579_v45, 16  ;;  %v3325_v51 = vld [vmem:[%s4822_s0 + $0x78] sm:$0xe]  ;;  %v2160_v34 = vshrl.u32 %v3274_v57, 16 }
  0xf6   :  { %1722 = vmatmul.bf16.gmra.mxu1 %v1638_v62  ;;  %1917 = vmatmul.bf16.gmra.mxu2 %v3201_v39  ;;  %v4543_v48 = vadd.f32 %v1446_v61, %v1061_v60  ;;  %v2463_v61 = vrot.slane %v4517_v3, 5  ;;  %v2240_v62 = vunpack.c.l.b16 %v2116_v2  ;;  %v2151_v60 = vrot.slane %v2149_v18, 5  ;;  %v3324_v18 = vld [vmem:[%s4822_s0 + $0x70] sm:$0xe] }
  0xf7   :  { %v1449_v47 = vpop.f32.mrf.mxu0  ;;  %v1639_v4 = vpack.c.b16 %v1628_v19, %v1627_v20  ;;  %v2157_v8 = vrot.slane %v2155_v33, 5  ;;  %v4636_v33 = vld [vmem:[%s4822_s0 + $0x8c] sm:$0x1] }
  0xf8   :  { %2335 = vmatmul.bf16.gmra.mxu3 %v2251_v14  ;;  %v2152_v49 = vor.u32 %v2151_v60, %v2148_v26  ;;  %v3340_v60 = vrot.slane %v3324_v18, 9 }
  0xf9   :  { %v836_v56 = vpop.f32.mrf.mxu2 }
  0xfa   :  { %v867_v53 = vadd.f32 %v836_v56, %v576_v59  ;;  %2609 = vmatmul.bf16.gmra.mxu0 %v2525_v46  ;;  %v2252_v46 = vpack.c.b16 %v2241_v35, %v2240_v62  ;;  %v3117_v56 = vld [vmem:[%s4822_s0 + $0x70] sm:$0xe]  ;;  %v2163_v62 = vshll.u32 %v3274_v57, 16 }
  0xfb   :  { %v1031_v54 = vpop.f32.mrf.mxu3  ;;  %v577_v40 = vpop.f32.mrf.mxu1  ;;  %v3133_v15 = vrot.slane %v3117_v56, 9 }
  0xfc   :  { %v1062_v17 = vadd.f32 %v1031_v54, %v867_v53  ;;  %v578_v39 = vadd.f32 %v577_v40, %v4322_v22  ;;  %v2464_v22 = vsel %vm3909_vm5, %v3339_v63, %v2463_v61  ;;  %v3595_v53 = vld [vmem:[%s4822_s0 + $0x6c] sm:$0x1]  ;;  %v1584_v40 = vrot.slane %v3596_v58, 5  ;;  %v3118_v58 = vld [vmem:[%s4822_s0 + $0x78] sm:$0xe] }
  0xfd   :  { %v2515_v7 = vunpack.c.l.b16 %v2464_v22  ;;  %v1580_v54 = vrot.slane %v3595_v53, 5  ;;  %v2143_v61 = vrot.slane %v2141_v1, 5  ;;  %v2174_v22 = vshrl.u32 %v3276_v11, 16 }
  0xfe   :  { %v4565_v3 = vadd.f32 %v1449_v47, %v1062_v17  ;;  %v2138_v47 = vor.u32 %v2137_v0, %v2134_v23  ;;  %v2177_v23 = vshll.u32 %v3276_v11, 16 }
  0xff   :  { %v1451_v14 = vpop.f32.mrf.mxu0  ;;  %v2526_v2 = vpack.c.b16 %v2515_v7, %v2514_v41  ;;  %v3208_v7 = vld [vmem:[%s4822_s0 + $0x70] sm:$0xf]  ;;  %v2176_v1 = vrot.slane %v2174_v22, 4  ;;  %v3598_v22 = vld [vmem:[%s4822_s0 + $0x84] sm:$0x1] }
 0x100   :  { %v2139_v63 = vrot.slane %v2138_v47, 4  ;;  %v3447_v47 = vld [vmem:[%s4822_s0 + $0x74] sm:$0xf0] }
 0x101   :  { %v838_v59 = vpop.f32.mrf.mxu2 }
 0x102   :  { %v868_v37 = vadd.f32 %v838_v59, %v578_v39  ;;  %v2153_v39 = vrot.slane %v2152_v49, 4  ;;  %v2144_v26 = vsel %vm3723_vm2, %v2139_v63, %v2143_v61  ;;  %v2467_v59 = vrot.slane %v4574_v24, 5  ;;  %v4629_v24 = vld [vmem:[%s4822_s0 + $0x84] sm:$0x1] }
 0x103   :  { %v1033_v29 = vpop.f32.mrf.mxu3  ;;  %v580_v21 = vpop.f32.mrf.mxu1  ;;  %v2242_v56 = vunpack.c.l.b16 %v2144_v26  ;;  %v2169_v63 = vshll.u32 %v4629_v24, 16 }
 0x104   :  { %v1063_v50 = vadd.f32 %v1033_v29, %v868_v37  ;;  %v581_v13 = vadd.f32 %v580_v21, %v4260_v5  ;;  %v1581_v5 = vsel %vm3909_vm5, %v3132_v28, %v1580_v54  ;;  %v2158_v37 = vsel %vm3723_vm2, %v2153_v39, %v2157_v8 }
 0x105   :  { %v3341_v29 = vrot.slane %v3325_v51, 9  ;;  %v1629_v41 = vunpack.c.l.b16 %v1581_v5  ;;  %v2162_v21 = vrot.slane %v2160_v34, 4  ;;  %v2243_v49 = vunpack.c.l.b16 %v2158_v37 }
 0x106   :  { %1727 = vmatmul.bf16.gmra.mxu1 %v1639_v4  ;;  %1922 = vmatmul.bf16.gmra.mxu2 %v3205_v27  ;;  %v4605_v20 = vadd.f32 %v1451_v14, %v1063_v50  ;;  %v1585_v14 = vsel %vm3909_vm5, %v3133_v15, %v1584_v40  ;;  %v2471_v4 = vrot.slane %v4579_v45, 5  ;;  %v2179_v50 = vrot.slane %v2177_v23, 5 }
 0x107   :  { %v1454_v17 = vpop.f32.mrf.mxu0  ;;  %v1630_v52 = vunpack.c.l.b16 %v1585_v14  ;;  %v2468_v53 = vsel %vm3909_vm5, %v3340_v60, %v2467_v59  ;;  %v3209_v15 = vor.u32 %v3447_v47, %v3208_v7  ;;  %v2183_v39 = vshll.u32 %v4636_v33, 16  ;;  %v3280_v47 = vld [vmem:[%s4822_s0 + $0x98] sm:$0xf] }
 0x108   :  { %2340 = vmatmul.bf16.gmra.mxu3 %v2252_v46  ;;  %v2165_v46 = vrot.slane %v2163_v62, 5  ;;  %v2472_v54 = vsel %vm3909_vm5, %v3341_v29, %v2471_v4  ;;  %v2253_v18 = vpack.c.b16 %v2243_v49, %v2242_v56  ;;  %v3134_v62 = vrot.slane %v3118_v58, 9  ;;  %v3327_v4 = vld [vmem:[%s4822_s0 + $0x88] sm:$0xe] }
 0x109   :  { %v841_v19 = vpop.f32.mrf.mxu2  ;;  %v2517_v51 = vunpack.c.l.b16 %v2472_v54  ;;  %v1592_v23 = vrot.slane %v3598_v22, 5  ;;  %v2171_v14 = vrot.slane %v2169_v63, 5  ;;  %v2185_v60 = vrot.slane %v2183_v39, 5 }
 0x10a   :  { %v869_v35 = vadd.f32 %v841_v19, %v581_v13  ;;  %2614 = vmatmul.bf16.gmra.mxu0 %v2526_v2  ;;  %v2166_v40 = vor.u32 %v2165_v46, %v2162_v21  ;;  %v1640_v13 = vpack.c.b16 %v1630_v52, %v1629_v41  ;;  %v2516_v19 = vunpack.c.l.b16 %v2468_v53  ;;  %v3278_v41 = vld [vmem:[%s4822_s0 + $0x90] sm:$0xf] }
 0x10b   :  { %v1036_v12 = vpop.f32.mrf.mxu3  ;;  %v582_v0 = vpop.f32.mrf.mxu1  ;;  %v3343_v53 = vrot.slane %v3327_v4, 9  ;;  %v2479_v54 = vrot.slane %v4636_v33, 5  ;;  %v2205_v63 = vshll.u32 %v3280_v47, 16 }
 0x10c   :  { %v1064_v27 = vadd.f32 %v1036_v12, %v869_v35  ;;  %v583_v2 = vadd.f32 %v582_v0, %v4294_v38  ;;  %v3119_v38 = vld [vmem:[%s4822_s0 + $0x80] sm:$0xe]  ;;  %v3597_v35 = vld [vmem:[%s4822_s0 + $0x7c] sm:$0x1]  ;;  %v2167_v0 = vrot.slane %v2166_v40, 4  ;;  %v2527_v59 = vpack.c.b16 %v2517_v51, %v2516_v19 }
 0x10d   :  { %v1588_v12 = vrot.slane %v3597_v35, 5  ;;  %v3135_v5 = vrot.slane %v3119_v38, 9  ;;  %v2202_v40 = vshrl.u32 %v3280_v47, 16 }
 0x10e   :  { %v4631_v45 = vadd.f32 %v1454_v17, %v1064_v27  ;;  %v2180_v17 = vor.u32 %v2179_v50, %v2176_v1  ;;  %v3326_v27 = vld [vmem:[%s4822_s0 + $0x80] sm:$0xe] }
 0x10f   :  { %v1456_v28 = vpop.f32.mrf.mxu0  ;;  %v1589_v46 = vsel %vm3909_vm5, %v3134_v62, %v1588_v12  ;;  %v1593_v52 = vsel %vm3909_vm5, %v3135_v5, %v1592_v23  ;;  %v3342_v49 = vrot.slane %v3326_v27, 9  ;;  %v4698_v62 = vld [vmem:[%s4822_s0 + $0x94] sm:$0x1]  ;;  %v2204_v35 = vrot.slane %v2202_v40, 4  ;;  %v3281_v23 = vld [vmem:[%s4822_s0 + $0x9c] sm:$0x1] }
 0x110   :  { %v2181_v26 = vrot.slane %v2180_v17, 4  ;;  %v2207_v12 = vrot.slane %v2205_v63, 5  ;;  %v2197_v4 = vshll.u32 %v4698_v62, 16  ;;  %v3328_v63 = vld [vmem:[%s4822_s0 + $0x90] sm:$0xe] }
 0x111   :  { %v843_v57 = vpop.f32.mrf.mxu2 }
 0x112   :  { %v870_v61 = vadd.f32 %v843_v57, %v583_v2  ;;  %v2186_v56 = vsel %vm3723_vm2, %v2181_v26, %v2185_v60  ;;  %v2475_v2 = vrot.slane %v4629_v24, 5  ;;  %v2188_v57 = vshrl.u32 %v3278_v41, 16  ;;  %v3448_v24 = vld [vmem:[%s4822_s0 + $0x84] sm:$0xf0] }
 0x113   :  { %v1038_v11 = vpop.f32.mrf.mxu3  ;;  %v585_v8 = vpop.f32.mrf.mxu1  ;;  %v2245_v17 = vunpack.c.l.b16 %v2186_v56 }
 0x114   :  { %v1065_v34 = vadd.f32 %v1038_v11, %v870_v61  ;;  %v586_v37 = vadd.f32 %v585_v8, %v4314_v6  ;;  %v2172_v6 = vsel %vm3723_vm2, %v2167_v0, %v2171_v14  ;;  %v1631_v61 = vunpack.c.l.b16 %v1589_v46 }
 0x115   :  { %v1632_v11 = vunpack.c.l.b16 %v1593_v52  ;;  %v2244_v38 = vunpack.c.l.b16 %v2172_v6  ;;  %v2476_v33 = vsel %vm3909_vm5, %v3342_v49, %v2475_v2  ;;  %v2480_v8 = vsel %vm3909_vm5, %v3343_v53, %v2479_v54  ;;  %v3600_v2 = vld [vmem:[%s4822_s0 + $0x94] sm:$0x1] }
 0x116   :  { %1732 = vmatmul.bf16.gmra.mxu1 %v1640_v13  ;;  %1927 = vmatmul.bf16.gmra.mxu2 %v3209_v15  ;;  %v4667_v7 = vadd.f32 %v1456_v28, %v1065_v34  ;;  %v2191_v15 = vshll.u32 %v3278_v41, 16  ;;  %v3212_v13 = vld [vmem:[%s4822_s0 + $0x80] sm:$0xf]  ;;  %v2518_v60 = vunpack.c.l.b16 %v2476_v33  ;;  %v2208_v46 = vor.u32 %v2207_v12, %v2204_v35 }
 0x117   :  { %v1459_v29 = vpop.f32.mrf.mxu0  ;;  %v3213_v22 = vor.u32 %v3448_v24, %v3212_v13  ;;  %v1641_v26 = vpack.c.b16 %v1632_v11, %v1631_v61  ;;  %v2254_v27 = vpack.c.b16 %v2245_v17, %v2244_v38  ;;  %v2211_v52 = vshll.u32 %v3281_v23, 16  ;;  %v3329_v11 = vld [vmem:[%s4822_s0 + $0x98] sm:$0xe] }
 0x118   :  { %2345 = vmatmul.bf16.gmra.mxu3 %v2253_v18  ;;  %v2190_v18 = vrot.slane %v2188_v57, 4  ;;  %v2193_v19 = vrot.slane %v2191_v15, 5  ;;  %v2199_v54 = vrot.slane %v2197_v4, 5  ;;  %v2487_v35 = vrot.slane %v3281_v23, 5 }
 0x119   :  { %v846_v21 = vpop.f32.mrf.mxu2  ;;  %v2213_v40 = vrot.slane %v2211_v52, 5 }
 0x11a   :  { %v871_v1 = vadd.f32 %v846_v21, %v586_v37  ;;  %2619 = vmatmul.bf16.gmra.mxu0 %v2527_v59  ;;  %v2519_v59 = vunpack.c.l.b16 %v2480_v8  ;;  %v3120_v37 = vld [vmem:[%s4822_s0 + $0x88] sm:$0xe]  ;;  %v3121_v21 = vld [vmem:[%s4822_s0 + $0x90] sm:$0xe]  ;;  %v3344_v8 = vrot.slane %v3328_v63, 9 }
 0x11b   :  { %v1041_v50 = vpop.f32.mrf.mxu3  ;;  %v587_v28 = vpop.f32.mrf.mxu1  ;;  %v3136_v47 = vrot.slane %v3120_v37, 9  ;;  %v3137_v49 = vrot.slane %v3121_v21, 9 }
 0x11c   :  { %v1066_v58 = vadd.f32 %v1041_v50, %v871_v1  ;;  %v588_v51 = vadd.f32 %v587_v28, %v4346_v42  ;;  %v2528_v6 = vpack.c.b16 %v2519_v59, %v2518_v60  ;;  %v3599_v1 = vld [vmem:[%s4822_s0 + $0x8c] sm:$0x1]  ;;  %v1600_v28 = vrot.slane %v3600_v2, 5 }
 0x11d   :  { %v1596_v50 = vrot.slane %v3599_v1, 5 }
 0x11e   :  { %v4688_v39 = vadd.f32 %v1459_v29, %v1066_v58  ;;  %v2194_v29 = vor.u32 %v2193_v19, %v2190_v18  ;;  %v2209_v58 = vrot.slane %v2208_v46, 4  ;;  %v2483_v18 = vrot.slane %v4698_v62, 5 }
 0x11f   :  { %v1461_v34 = vpop.f32.mrf.mxu0  ;;  %v1597_v38 = vsel %vm3909_vm5, %v3136_v47, %v1596_v50 }
 0x120   :  { %v2195_v53 = vrot.slane %v2194_v29, 4  ;;  %v1633_v12 = vunpack.c.l.b16 %v1597_v38  ;;  %v2484_v23 = vsel %vm3909_vm5, %v3344_v8, %v2483_v18 }
 0x121   :  { %v848_v5 = vpop.f32.mrf.mxu2  ;;  %v2520_v46 = vunpack.c.l.b16 %v2484_v23 }
 0x122   :  { %v872_v0 = vadd.f32 %v848_v5, %v588_v51  ;;  %v2200_v33 = vsel %vm3723_vm2, %v2195_v53, %v2199_v54  ;;  %v2214_v51 = vsel %vm3723_vm2, %v2209_v58, %v2213_v40 }
 0x123   :  { %v1043_v14 = vpop.f32.mrf.mxu3  ;;  %v590_v42 = vpop.f32.mrf.mxu1  ;;  %v2247_v62 = vunpack.c.l.b16 %v2214_v51 }
 0x124   :  { %v1067_v41 = vadd.f32 %v1043_v14, %v872_v0  ;;  %v591_v57 = vadd.f32 %v590_v42, %v4262_v9  ;;  %v1601_v9 = vsel %vm3909_vm5, %v3137_v49, %v1600_v28  ;;  %v3216_v0 = vld [vmem:[%s4822_s0 + $0x90] sm:$0xf]  ;;  %v3449_v14 = vld [vmem:[%s4822_s0 + $0x94] sm:$0xf0] }
 0x125   :  { %v1634_v5 = vunpack.c.l.b16 %v1601_v9  ;;  %v3217_v4 = vor.u32 %v3449_v14, %v3216_v0 }
 0x126   :  { %1737 = vmatmul.bf16.gmra.mxu1 %v1641_v26  ;;  %1932 = vmatmul.bf16.gmra.mxu2 %v3213_v22  ;;  %v4713_v56 = vadd.f32 %v1461_v34, %v1067_v41  ;;  %v3345_v34 = vrot.slane %v3329_v11, 9  ;;  %v2246_v26 = vunpack.c.l.b16 %v2200_v33 }
 0x127   :  { %v1464_v15 = vpop.f32.mrf.mxu0  ;;  %v1642_v29 = vpack.c.b16 %v1634_v5, %v1633_v12 }
 0x128   :  { %2350 = vmatmul.bf16.gmra.mxu3 %v2254_v27  ;;  %v2488_v59 = vsel %vm3909_vm5, %v3345_v34, %v2487_v35  ;;  %v2255_v21 = vpack.c.b16 %v2247_v62, %v2246_v26  ;;  %v3475_v26 = vld [vmem:[%s4825_s3] sm:$0xff]  }
 0x129   :  { %v851_v61 = vpop.f32.mrf.mxu2  ;;  %v2521_v52 = vunpack.c.l.b16 %v2488_v59  ;;  %v3476_v23 = vunpack.c.l.bf16 %v3475_v26  ;;  %v3477_v59 = vunpack.c.h.bf16 %v3475_v26 }
 0x12a   :  { %v873_v13 = vadd.f32 %v851_v61, %v591_v57  ;;  %2624 = vmatmul.bf16.gmra.mxu0 %v2528_v6 }
 0x12b   :  { %v1046_v24 = vpop.f32.mrf.mxu3  ;;  %v592_v17 = vpop.f32.mrf.mxu1  ;;  %v2529_v47 = vpack.c.b16 %v2521_v52, %v2520_v46 }
 0x12c   :  { %v1068_v19 = vadd.f32 %v1046_v24, %v873_v13  ;;  %v593_v60 = vadd.f32 %v592_v17, %v4296_v43 }
 0x12e   :  { %v4734_v22 = vadd.f32 %v1464_v15, %v1068_v19 }
 0x12f   :  { %v1466_v30 = vpop.f32.mrf.mxu0 }
 0x131   :  { %v853_v42 = vpop.f32.mrf.mxu2 }
 0x132   :  { %v874_v27 = vadd.f32 %v853_v42, %v593_v60 }
 0x133   :  { %v1048_v37 = vpop.f32.mrf.mxu3  ;;  %v595_v41 = vpop.f32.mrf.mxu1 }
 0x134   :  { %v1069_v6 = vadd.f32 %v1048_v37, %v874_v27  ;;  %v596_v1 = vadd.f32 %v595_v41, %v4318_v10 }
 0x136   :  { %1742 = vmatmul.bf16.gmra.mxu1 %v1642_v29  ;;  %1937 = vmatmul.bf16.gmra.mxu2 %v3217_v4  ;;  %v4747_v43 = vadd.f32 %v1466_v30, %v1069_v6 }
 0x137   :  { %v1469_v16 = vpop.f32.mrf.mxu0 }
 0x138   :  { %2355 = vmatmul.bf16.gmra.mxu3 %v2255_v21 }
 0x139   :  { %v856_v50 = vpop.f32.mrf.mxu2 }
 0x13a   :  { %v875_v49 = vadd.f32 %v856_v50, %v596_v1  ;;  %2629 = vmatmul.bf16.gmra.mxu0 %v2529_v47 }
 0x13b   :  { %v1051_v2 = vpop.f32.mrf.mxu3  ;;  %v597_v28 = vpop.f32.mrf.mxu1 }
 0x13c   :  { %v1070_v53 = vadd.f32 %v1051_v2, %v875_v49  ;;  %v598_v57 = vadd.f32 %v597_v28, %v4348_v44  ;;  %v4759_v44 = vld [vmem:[%s4824_s2] ss:$0 sm:$0xff] }
 0x13e   :  { %v4750_v54 = vadd.f32 %v1469_v16, %v1070_v53 }
 0x13f   :  { %v1471_v15 = vpop.f32.mrf.mxu0 }
 0x141   :  { %v858_v58 = vpop.f32.mrf.mxu2 }
 0x142   :  { %v876_v40 = vadd.f32 %v858_v58, %v598_v57  ;;  %v3546_v58 = vld [vmem:[%s4825_s3 + $0x8] sm:$0xff]  }
 0x143   :  { %v1053_v63 = vpop.f32.mrf.mxu3  ;;  %v1708_v61 = vpop.f32.mrf.mxu1 }
 0x144   :  { %v1071_v11 = vadd.f32 %v1053_v63, %v876_v40  ;;  %v1748_v10 = vadd.f32 %v1708_v61, %v4395_v25 }
 0x146   :  { %v4753_v13 = vadd.f32 %v1471_v15, %v1071_v11  ;;  %v3480_v11 = vunpack.c.l.bf16 %v3546_v58 }
 0x147   :  { %v2595_v24 = vpop.f32.mrf.mxu0 }
 0x149   :  { %v1903_v38 = vpop.f32.mrf.mxu2 }
 0x14a   :  { %v1943_v17 = vadd.f32 %v1903_v38, %v1748_v10  ;;  %v3481_v10 = vunpack.c.h.bf16 %v3546_v58 }
 0x14b   :  { %v2321_v9 = vpop.f32.mrf.mxu3  ;;  %v1710_v33 = vpop.f32.mrf.mxu1 }
 0x14c   :  { %v2361_v8 = vadd.f32 %v2321_v9, %v1943_v17  ;;  %v1749_v19 = vadd.f32 %v1710_v33, %v4432_v55 }
 0x14e   :  { %v2635_v18 = vadd.f32 %v2595_v24, %v2361_v8 }
 0x14f   :  { %v2597_v51 = vpop.f32.mrf.mxu0 }
 0x150   :  { %v2655_v35 = vadd.f32 %v4759_v44, %v2635_v18 }
 0x151   :  { %v1905_v34 = vpop.f32.mrf.mxu2 }
 0x152   :  { %v1944_v12 = vadd.f32 %v1905_v34, %v1749_v19  ;;  %v2687_v14 = vmul.f32 0.01, %v2655_v35  ;;  %vm2671_vm6 = vcmp.ge.f32.partialorder %v2655_v35, 0.0 }
 0x153   :  { %v2323_v25 = vpop.f32.mrf.mxu3  ;;  %v1713_v5 = vpop.f32.mrf.mxu1 }
 0x154   :  { %v2362_v0 = vadd.f32 %v2323_v25, %v1944_v12  ;;  %v1750_v30 = vadd.f32 %v1713_v5, %v4453_v31  ;;  %v2703_v27 = vsel %vm2671_vm6, %v2655_v35, %v2687_v14 }
 0x155   :  { %v2751_v52 = vadd.f32 %v3476_v23, %v2703_v27 }
 0x156   :  { %v2636_v62 = vadd.f32 %v2597_v51, %v2362_v0 }
 0x157   :  { %v2600_v55 = vpop.f32.mrf.mxu0 }
 0x158   :  { %v2656_v60 = vadd.f32 %v4759_v44, %v2636_v62 }
 0x159   :  { %v1908_v42 = vpop.f32.mrf.mxu2 }
 0x15a   :  { %vm2672_vm7 = vcmp.ge.f32.partialorder %v2656_v60, 0.0  ;;  %v2688_v37 = vmul.f32 0.01, %v2656_v60  ;;  %v1945_v29 = vadd.f32 %v1908_v42, %v1750_v30 }
 0x15b   :  { %v2326_v4 = vpop.f32.mrf.mxu3  ;;  %v1715_v41 = vpop.f32.mrf.mxu1 }
 0x15c   :  { %v2704_v21 = vsel %vm2672_vm7, %v2656_v60, %v2688_v37  ;;  %v2363_v46 = vadd.f32 %v2326_v4, %v1945_v29  ;;  %v1751_v16 = vadd.f32 %v1715_v41, %v4485_v32 }
 0x15d   :  { %v2752_v6 = vadd.f32 %v3477_v59, %v2704_v21 }
 0x15e   :  { %v2637_v47 = vadd.f32 %v2600_v55, %v2363_v46  ;;  %v3547_v55 = vld [vmem:[%s4825_s3 + $0x10] sm:$0xff]  }
 0x15f   :  { %v3509_v1 = vpack.c.bf16 %v2752_v6, %v2751_v52  ;;  %v2602_v50 = vpop.f32.mrf.mxu0  ;;  %v3484_v27 = vunpack.c.l.bf16 %v3547_v55  ;;  %v3485_v37 = vunpack.c.h.bf16 %v3547_v55  ;;  %v3549_v55 = vld [vmem:[%s4825_s3 + $0x20] sm:$0xff]  }
 0x160   :  { %v2657_v49 = vadd.f32 %v4759_v44, %v2637_v47 }
 0x161   :  { %3510 = vst [vmem:[#allocation5] sm:$0xff] %v3509_v1   ;;  %v1910_v31 = vpop.f32.mrf.mxu2 }
 0x162   :  { %v1946_v2 = vadd.f32 %v1910_v31, %v1751_v16  ;;  %v2689_v15 = vmul.f32 0.01, %v2657_v49  ;;  %vm2673_vm8 = vcmp.ge.f32.partialorder %v2657_v49, 0.0 }
 0x163   :  { %v2328_v28 = vpop.f32.mrf.mxu3  ;;  %v1718_v53 = vpop.f32.mrf.mxu1 }
 0x164   :  { %v2364_v57 = vadd.f32 %v2328_v28, %v1946_v2  ;;  %v1752_v32 = vadd.f32 %v1718_v53, %v4512_v36  ;;  %v2705_v38 = vsel %vm2673_vm8, %v2657_v49, %v2689_v15 }
 0x165   :  { %v2753_v51 = vadd.f32 %v3480_v11, %v2705_v38 }
 0x166   :  { %v2638_v40 = vadd.f32 %v2602_v50, %v2364_v57 }
 0x167   :  { %v2605_v61 = vpop.f32.mrf.mxu0 }
 0x168   :  { %v2658_v63 = vadd.f32 %v4759_v44, %v2638_v40 }
 0x169   :  { %v1913_v24 = vpop.f32.mrf.mxu2 }
 0x16a   :  { %vm2674_vm9 = vcmp.ge.f32.partialorder %v2658_v63, 0.0  ;;  %v2690_v17 = vmul.f32 0.01, %v2658_v63  ;;  %v1947_v9 = vadd.f32 %v1913_v24, %v1752_v32 }
 0x16b   :  { %v2331_v33 = vpop.f32.mrf.mxu3  ;;  %v1720_v8 = vpop.f32.mrf.mxu1 }
 0x16c   :  { %v2706_v18 = vsel %vm2674_vm9, %v2658_v63, %v2690_v17  ;;  %v2365_v19 = vadd.f32 %v2331_v33, %v1947_v9  ;;  %v1753_v25 = vadd.f32 %v1720_v8, %v4543_v48  ;;  %v3548_v63 = vld [vmem:[%s4825_s3 + $0x18] sm:$0xff]  }
 0x16d   :  { %v2754_v34 = vadd.f32 %v3481_v10, %v2706_v18  ;;  %v3488_v10 = vunpack.c.l.bf16 %v3548_v63  ;;  %v3489_v24 = vunpack.c.h.bf16 %v3548_v63 }
 0x16e   :  { %v2639_v35 = vadd.f32 %v2605_v61, %v2365_v19 }
 0x16f   :  { %v3514_v12 = vpack.c.bf16 %v2754_v34, %v2753_v51  ;;  %v2607_v5 = vpop.f32.mrf.mxu0 }
 0x170   :  { %v2659_v0 = vadd.f32 %v4759_v44, %v2639_v35 }
 0x171   :  { %3553 = vst [vmem:[#allocation5 + $0x8] sm:$0xff] %v3514_v12   ;;  %v1915_v36 = vpop.f32.mrf.mxu2 }
 0x172   :  { %v1948_v14 = vadd.f32 %v1915_v36, %v1753_v25  ;;  %v2691_v30 = vmul.f32 0.01, %v2659_v0  ;;  %vm2675_vm10 = vcmp.ge.f32.partialorder %v2659_v0, 0.0 }
 0x173   :  { %v2333_v26 = vpop.f32.mrf.mxu3  ;;  %v1723_v62 = vpop.f32.mrf.mxu1 }
 0x174   :  { %v2366_v60 = vadd.f32 %v2333_v26, %v1948_v14  ;;  %v1754_v48 = vadd.f32 %v1723_v62, %v4565_v3  ;;  %v2707_v4 = vsel %vm2675_vm10, %v2659_v0, %v2691_v30 }
 0x175   :  { %v2755_v1 = vadd.f32 %v3484_v27, %v2707_v4  ;;  %v3493_v27 = vunpack.c.h.bf16 %v3549_v55 }
 0x176   :  { %v2640_v23 = vadd.f32 %v2607_v5, %v2366_v60 }
 0x177   :  { %v2610_v42 = vpop.f32.mrf.mxu0 }
 0x178   :  { %v2660_v59 = vadd.f32 %v4759_v44, %v2640_v23 }
 0x179   :  { %v1918_v29 = vpop.f32.mrf.mxu2 }
 0x17a   :  { %vm2676_vm11 = vcmp.ge.f32.partialorder %v2660_v59, 0.0  ;;  %v2692_v41 = vmul.f32 0.01, %v2660_v59  ;;  %v1949_v21 = vadd.f32 %v1918_v29, %v1754_v48 }
 0x17b   :  { %v2336_v46 = vpop.f32.mrf.mxu3  ;;  %v1725_v52 = vpop.f32.mrf.mxu1 }
 0x17c   :  { %v2708_v6 = vsel %vm2676_vm11, %v2660_v59, %v2692_v41  ;;  %v2367_v47 = vadd.f32 %v2336_v46, %v1949_v21  ;;  %v1755_v49 = vadd.f32 %v1725_v52, %v4605_v20 }
 0x17d   :  { %v2756_v16 = vadd.f32 %v3485_v37, %v2708_v6 }
 0x17e   :  { %v2641_v50 = vadd.f32 %v2610_v42, %v2367_v47  ;;  %v3492_v42 = vunpack.c.l.bf16 %v3549_v55 }
 0x17f   :  { %v3519_v31 = vpack.c.bf16 %v2756_v16, %v2755_v1  ;;  %v2612_v2 = vpop.f32.mrf.mxu0 }
 0x180   :  { %v2661_v28 = vadd.f32 %v4759_v44, %v2641_v50 }
 0x181   :  { %3554 = vst [vmem:[#allocation5 + $0x10] sm:$0xff] %v3519_v31   ;;  %v1920_v3 = vpop.f32.mrf.mxu2 }
 0x182   :  { %v1950_v53 = vadd.f32 %v1920_v3, %v1755_v49  ;;  %v2693_v40 = vmul.f32 0.01, %v2661_v28  ;;  %vm2677_vm12 = vcmp.ge.f32.partialorder %v2661_v28, 0.0 }
 0x183   :  { %v2338_v57 = vpop.f32.mrf.mxu3  ;;  %v1728_v15 = vpop.f32.mrf.mxu1 }
 0x184   :  { %v2368_v58 = vadd.f32 %v2338_v57, %v1950_v53  ;;  %v1756_v20 = vadd.f32 %v1728_v15, %v4631_v45  ;;  %v2709_v17 = vsel %vm2677_vm12, %v2661_v28, %v2693_v40 }
 0x185   :  { %v2757_v34 = vadd.f32 %v3488_v10, %v2709_v17 }
 0x186   :  { %v2642_v32 = vadd.f32 %v2612_v2, %v2368_v58  ;;  %v3550_v58 = vld [vmem:[%s4825_s3 + $0x28] sm:$0xff]  }
 0x187   :  { %v2615_v11 = vpop.f32.mrf.mxu0 }
 0x188   :  { %v2662_v61 = vadd.f32 %v4759_v44, %v2642_v32 }
 0x189   :  { %v1923_v38 = vpop.f32.mrf.mxu2 }
 0x18a   :  { %vm2678_vm13 = vcmp.ge.f32.partialorder %v2662_v61, 0.0  ;;  %v2694_v9 = vmul.f32 0.01, %v2662_v61  ;;  %v1951_v33 = vadd.f32 %v1923_v38, %v1756_v20  ;;  %v3497_v20 = vunpack.c.h.bf16 %v3550_v58 }
 0x18b   :  { %v2341_v8 = vpop.f32.mrf.mxu3  ;;  %v1730_v18 = vpop.f32.mrf.mxu1 }
 0x18c   :  { %v2710_v19 = vsel %vm2678_vm13, %v2662_v61, %v2694_v9  ;;  %v2369_v51 = vadd.f32 %v2341_v8, %v1951_v33  ;;  %v1757_v5 = vadd.f32 %v1730_v18, %v4667_v7  ;;  %v3496_v61 = vunpack.c.l.bf16 %v3550_v58 }
 0x18d   :  { %v2758_v35 = vadd.f32 %v3489_v24, %v2710_v19 }
 0x18e   :  { %v2643_v12 = vadd.f32 %v2615_v11, %v2369_v51 }
 0x18f   :  { %v3524_v25 = vpack.c.bf16 %v2758_v35, %v2757_v34  ;;  %v2617_v36 = vpop.f32.mrf.mxu0 }
 0x190   :  { %v2663_v0 = vadd.f32 %v4759_v44, %v2643_v12 }
 0x191   :  { %3555 = vst [vmem:[#allocation5 + $0x18] sm:$0xff] %v3524_v25   ;;  %v1925_v45 = vpop.f32.mrf.mxu2 }
 0x192   :  { %v1952_v14 = vadd.f32 %v1925_v45, %v1757_v5  ;;  %v2695_v30 = vmul.f32 0.01, %v2663_v0  ;;  %vm2679_vm14 = vcmp.ge.f32.partialorder %v2663_v0, 0.0 }
 0x193   :  { %v2343_v26 = vpop.f32.mrf.mxu3  ;;  %v1733_v62 = vpop.f32.mrf.mxu1 }
 0x194   :  { %v2370_v60 = vadd.f32 %v2343_v26, %v1952_v14  ;;  %v1758_v7 = vadd.f32 %v1733_v62, %v4688_v39  ;;  %v2711_v29 = vsel %vm2679_vm14, %v2663_v0, %v2695_v30  ;;  %v3551_v26 = vld [vmem:[%s4825_s3 + $0x30] sm:$0xff]  }
 0x195   :  { %v2759_v47 = vadd.f32 %v3492_v42, %v2711_v29  ;;  %v3500_v30 = vunpack.c.l.bf16 %v3551_v26  ;;  %v3501_v55 = vunpack.c.h.bf16 %v3551_v26 }
 0x196   :  { %v2644_v23 = vadd.f32 %v2617_v36, %v2370_v60 }
 0x197   :  { %v2620_v48 = vpop.f32.mrf.mxu0 }
 0x198   :  { %v2664_v59 = vadd.f32 %v4759_v44, %v2644_v23 }
 0x199   :  { %v1928_v37 = vpop.f32.mrf.mxu2 }
 0x19a   :  { %vm2680_vm15 = vcmp.ge.f32.partialorder %v2664_v59, 0.0  ;;  %v2696_v4 = vmul.f32 0.01, %v2664_v59  ;;  %v1953_v41 = vadd.f32 %v1928_v37, %v1758_v7 }
 0x19b   :  { %v2346_v21 = vpop.f32.mrf.mxu3  ;;  %v1735_v46 = vpop.f32.mrf.mxu1 }
 0x19c   :  { %v2712_v52 = vsel %vm2680_vm15, %v2664_v59, %v2696_v4  ;;  %v2371_v6 = vadd.f32 %v2346_v21, %v1953_v41  ;;  %v1759_v31 = vadd.f32 %v1735_v46, %v4713_v56 }
 0x19d   :  { %v2760_v1 = vadd.f32 %v3493_v27, %v2712_v52 }
 0x19e   :  { %v2645_v16 = vadd.f32 %v2620_v48, %v2371_v6 }
 0x19f   :  { %v3529_v50 = vpack.c.bf16 %v2760_v1, %v2759_v47  ;;  %v2622_v49 = vpop.f32.mrf.mxu0 }
 0x1a0   :  { %v2665_v2 = vadd.f32 %v4759_v44, %v2645_v16 }
 0x1a1   :  { %3556 = vst [vmem:[#allocation5 + $0x20] sm:$0xff] %v3529_v50   ;;  %v1930_v39 = vpop.f32.mrf.mxu2 }
 0x1a2   :  { %v1954_v3 = vadd.f32 %v1930_v39, %v1759_v31  ;;  %v2697_v15 = vmul.f32 0.01, %v2665_v2  ;;  %vm2681_vm0 = vcmp.ge.f32.partialorder %v2665_v2, 0.0  ;;  %v3552_v39 = vld [vmem:[%s4825_s3 + $0x38] sm:$0xff]  }
 0x1a3   :  { %v2348_v28 = vpop.f32.mrf.mxu3  ;;  %v1738_v53 = vpop.f32.mrf.mxu1 }
 0x1a4   :  { %v2372_v57 = vadd.f32 %v2348_v28, %v1954_v3  ;;  %v1760_v56 = vadd.f32 %v1738_v53, %v4734_v22  ;;  %v2713_v10 = vsel %vm2681_vm0, %v2665_v2, %v2697_v15  ;;  %v3504_v28 = vunpack.c.l.bf16 %v3552_v39 }
 0x1a5   :  { %v2761_v18 = vadd.f32 %v3496_v61, %v2713_v10  ;;  %v3505_v53 = vunpack.c.h.bf16 %v3552_v39 }
 0x1a6   :  { %v2646_v40 = vadd.f32 %v2622_v49, %v2372_v57 }
 0x1a7   :  { %v2625_v32 = vpop.f32.mrf.mxu0 }
 0x1a8   :  { %v2666_v63 = vadd.f32 %v4759_v44, %v2646_v40 }
 0x1a9   :  { %v1933_v11 = vpop.f32.mrf.mxu2 }
 0x1aa   :  { %vm2682_vm1 = vcmp.ge.f32.partialorder %v2666_v63, 0.0  ;;  %v2698_v24 = vmul.f32 0.01, %v2666_v63  ;;  %v1955_v38 = vadd.f32 %v1933_v11, %v1760_v56 }
 0x1ab   :  { %v2351_v17 = vpop.f32.mrf.mxu3  ;;  %v1740_v9 = vpop.f32.mrf.mxu1 }
 0x1ac   :  { %v2714_v33 = vsel %vm2682_vm1, %v2666_v63, %v2698_v24  ;;  %v2373_v8 = vadd.f32 %v2351_v17, %v1955_v38  ;;  %v1761_v35 = vadd.f32 %v1740_v9, %v4747_v43 }
 0x1ad   :  { %v2762_v19 = vadd.f32 %v3497_v20, %v2714_v33 }
 0x1ae   :  { %v2647_v51 = vadd.f32 %v2625_v32, %v2373_v8 }
 0x1af   :  { %v3534_v34 = vpack.c.bf16 %v2762_v19, %v2761_v18  ;;  %v2627_v22 = vpop.f32.mrf.mxu0 }
 0x1b0   :  { %v2667_v25 = vadd.f32 %v4759_v44, %v2647_v51 }
 0x1b1   :  { %3557 = vst [vmem:[#allocation5 + $0x28] sm:$0xff] %v3534_v34   ;;  %v1935_v12 = vpop.f32.mrf.mxu2 }
 0x1b2   :  { %v1956_v5 = vadd.f32 %v1935_v12, %v1761_v35  ;;  %v2699_v14 = vmul.f32 0.01, %v2667_v25  ;;  %vm2683_vm2 = vcmp.ge.f32.partialorder %v2667_v25, 0.0 }
 0x1b3   :  { %v2353_v36 = vpop.f32.mrf.mxu3  ;;  %v1743_v45 = vpop.f32.mrf.mxu1 }
 0x1b4   :  { %v2374_v0 = vadd.f32 %v2353_v36, %v1956_v5  ;;  %v1762_v43 = vadd.f32 %v1743_v45, %v4750_v54  ;;  %v2715_v59 = vsel %vm2683_vm2, %v2667_v25, %v2699_v14 }
 0x1b5   :  { %v2763_v4 = vadd.f32 %v3500_v30, %v2715_v59 }
 0x1b6   :  { %v2648_v62 = vadd.f32 %v2627_v22, %v2374_v0 }
 0x1b7   :  { %v2630_v27 = vpop.f32.mrf.mxu0 }
 0x1b8   :  { %v2668_v60 = vadd.f32 %v4759_v44, %v2648_v62 }
 0x1b9   :  { %v1938_v23 = vpop.f32.mrf.mxu2 }
 0x1ba   :  { %vm2684_vm3 = vcmp.ge.f32.partialorder %v2668_v60, 0.0  ;;  %v2700_v7 = vmul.f32 0.01, %v2668_v60  ;;  %v1957_v48 = vadd.f32 %v1938_v23, %v1762_v43 }
 0x1bb   :  { %v2356_v42 = vpop.f32.mrf.mxu3  ;;  %v1745_v21 = vpop.f32.mrf.mxu1 }
 0x1bc   :  { %v2716_v37 = vsel %vm2684_vm3, %v2668_v60, %v2700_v7  ;;  %v2375_v29 = vadd.f32 %v2356_v42, %v1957_v48  ;;  %v1763_v6 = vadd.f32 %v1745_v21, %v4753_v13 }
 0x1bd   :  { %v2764_v41 = vadd.f32 %v3501_v55, %v2716_v37 }
 0x1be   :  { %v2649_v46 = vadd.f32 %v2630_v27, %v2375_v29 }
 0x1bf   :  { %v3539_v52 = vpack.c.bf16 %v2764_v41, %v2763_v4  ;;  %v2632_v31 = vpop.f32.mrf.mxu0 }
 0x1c0   :  { %v2669_v47 = vadd.f32 %v4759_v44, %v2649_v46 }
 0x1c1   :  { %3558 = vst [vmem:[#allocation5 + $0x30] sm:$0xff] %v3539_v52   ;;  %v1940_v54 = vpop.f32.mrf.mxu2 }
 0x1c2   :  { %v1958_v1 = vadd.f32 %v1940_v54, %v1763_v6  ;;  %v2701_v49 = vmul.f32 0.01, %v2669_v47  ;;  %vm2685_vm4 = vcmp.ge.f32.partialorder %v2669_v47, 0.0 }
 0x1c3   :  { %v2358_v16 = vpop.f32.mrf.mxu3 }
 0x1c4   :  { %v2376_v50 = vadd.f32 %v2358_v16, %v1958_v1  ;;  %v2717_v13 = vsel %vm2685_vm4, %v2669_v47, %v2701_v49 }
 0x1c5   :  { %v2765_v58 = vadd.f32 %v3504_v28, %v2717_v13 }
 0x1c6   :  { %v2650_v2 = vadd.f32 %v2632_v31, %v2376_v50 }
 0x1c8   :  { %v2670_v3 = vadd.f32 %v4759_v44, %v2650_v2 }
 0x1ca   :  { %vm2686_vm5 = vcmp.ge.f32.partialorder %v2670_v3, 0.0  ;;  %v2702_v57 = vmul.f32 0.01, %v2670_v3 }
 0x1cc   :  { %v2718_v15 = vsel %vm2686_vm5, %v2670_v3, %v2702_v57 }
 0x1cd   :  { %v2766_v40 = vadd.f32 %v3505_v53, %v2718_v15 }
 0x1cf   :  { %v3544_v63 = vpack.c.bf16 %v2766_v40, %v2765_v58 }
 0x1d1   :  { %3559 = vst [vmem:[#allocation5 + $0x38] sm:$0xff] %v3544_v63  }
 0x1d2   :  { %2811 = dma.vmem_to_hbm [thread:$0]  %s2804_s22, 1024, %s2806_s24, [#allocation4], %s3654_s20, %s3654_s20, %s3655_s21  }
 0x1d3   :  { %3651 = dma.done.wait [#allocation4], 1024  }
 0x1d4   :  { %3652 = vsyncadd [#allocation4], 4294966272 }
 0x1d5   :  { %2816 = vsyncpa [#allocation3], 1 }
 0x1d6   :  { %2817 = vsyncpa [#allocation4], 1 }

</bundles_post_ra>
